<compile_context>
chip_gen: v7x
topology: tpu7x:2x2x1
jax: 0.10.0
libtpu: 0.0.40
codegen_flags: <defaults>
</compile_context>

<pallas_src>
import functools

import jax
import jax.numpy as jnp
from jax.experimental import pallas as pl
from jax.experimental.pallas import tpu as pltpu

QMAX = 127.0  # 8-bit symmetric quantization levels: [-127, 127]


def _round_up(x, m):
    return (x + m - 1) // m * m


def _symmetric_delta(t):
    """Per-tensor symmetric max-abs 8-bit scale (plain JAX scalar reduction)."""
    return jnp.maximum(jnp.max(jnp.abs(t)) / QMAX, 1e-8)


def _int8_mxu_available():
    """int8 MXU exists on v4/v5/v6; v7x has no integer MXU (keep bf16 there)."""
    try:
        kind = jax.devices()[0].device_kind.lower()
    except Exception:  # pragma: no cover
        return False
    if "v7" in kind:
        return False
    return any(g in kind for g in ("v4", "v5", "v6"))


def _pick_tile_rows(h_out, w_p, cap_rows=256):
    """Largest TH dividing h_out with TH*w_p <= cap_rows and TH*w_p % 8 == 0 (else one tile)."""
    best = h_out  # fallback: single tile per sample (offset 0 -> alignment is trivial)
    for th in range(1, h_out + 1):
        tm = th * w_p
        if h_out % th == 0 and tm <= cap_rows and tm % 8 == 0:
            best = th
    return best


# ---------------------------------------------------------------------------
# Fused kernel: activation fake-quant + in-VMEM im2col + ONE big-K matmul + dequant + bias
# ---------------------------------------------------------------------------
def _fused_quant_conv_kernel(scale_ref, x_ref, w_ref, b_ref, o_ref, *,
                             KH, KW, Wp, TM, OC, op_dtype, acc_dtype):
    # scale_ref: SMEM f32[2] = [1/delta_a, delta_a*delta_w]   (scalar prefetch)
    # x_ref:     (1, flat_len, Cp) f32   padded NHWC activation, spatial flattened (resident over t)
    # w_ref:     (KH*KW*Cp, OCp)   int8/bf16 quantized integer weights (resident)
    # b_ref:     (1, OC) f32             bias (resident)
    # o_ref:     (1, TM, OC) f32         output-row tile (pseudo-rows: Wp cols/row, W_out valid)
    inv_delta_a = scale_ref[0]
    out_scale = scale_ref[1]

    t = pl.program_id(1)
    row0 = t * TM
    if TM % 8 == 0:
        row0 = pl.multiple_of(row0, 8)          # sublane-aligned window start
    win = TM + (KH - 1) * Wp + (KW - 1)         # input pseudo-rows needed by this output tile

    x = x_ref[0, pl.ds(row0, win), :]           # (win, Cp) f32
    # Fused per-tensor symmetric fake quant of the activation -> exact small integers (f32).
    q = jnp.clip(jnp.round(x * inv_delta_a), -QMAX, QMAX)

    # In-VMEM im2col: fold the KH*KW taps into the contraction dim -> one big-K MXU matmul.
    taps = [q[kh * Wp + kw: kh * Wp + kw + TM, :]
            for kh in range(KH) for kw in range(KW)]
    im2col = jnp.concatenate(taps, axis=-1).astype(op_dtype)       # (TM, KH*KW*Cp)

    acc = jnp.dot(im2col, w_ref[...], preferred_element_type=acc_dtype)   # (TM, OCp)
    acc = acc.astype(jnp.float32)

    # Dequant + bias on the un-padded OC slice; store without OC padding (16x less HBM write).
    o_ref[0] = (acc[:, :OC] * out_scale + b_ref[...]).astype(o_ref.dtype)


# ---------------------------------------------------------------------------
# FakeQuantModule forward (Conv2d variant, stride=1, dilation=1, groups=1)
# ---------------------------------------------------------------------------
def _forward_impl(x_nchw, weight, bias, *, padding, use_int8):
    N, C, H, W = x_nchw.shape
    OC, Cw, KH, KW = weight.shape
    assert Cw == C
    p = padding
    H_out = H + 2 * p - KH + 1
    W_out = W + 2 * p - KW + 1
    assert H_out >= 1 and W_out >= 1
    Wp = W + 2 * p                      # padded width
    M = H_out * Wp                      # pseudo-rows (W_out valid cols/row, rest discarded)

    op_dtype = jnp.int8 if use_int8 else jnp.bfloat16
    acc_dtype = jnp.int32 if use_int8 else jnp.float32
    op_bytes = 1 if use_int8 else 2

    # ---- weight fake-quant (per-tensor symmetric 8-bit): tiny & static -> plain JAX
    delta_w = _symmetric_delta(weight)
    q_w = jnp.clip(jnp.round(weight / delta_w), -QMAX, QMAX)       # integer-valued f32

    # ---- dynamic activation scale: single scalar reduction in plain JAX (one HBM read)
    delta_a = _symmetric_delta(x_nchw)
    inv_delta_a = 1.0 / delta_a
    out_scale = delta_a * delta_w

    # ---- TPU-friendly padding: sublane-aligned C, lane-dense OCp for the matmul RHS only
    Cp = _round_up(C, 8)
    OCp = _round_up(OC, 128)
    Kc = KH * KW * Cp                    # folded contraction dim

    # weight -> (KH*KW*Cp, OCp) quantized integers (exact in int8 / bf16)
    w_r = jnp.transpose(q_w, (2, 3, 1, 0))                         # (KH, KW, C, OC)
    w_r = jnp.pad(w_r, ((0, 0), (0, 0), (0, Cp - C), (0, OCp - OC)))
    w_r = w_r.reshape(Kc, OCp).astype(op_dtype)

    bias_r = bias.reshape(1, OC).astype(jnp.float32)

    # activation: NCHW -> NHWC, zero-pad spatially (+1 extra bottom row so the last shifted
    # window of the flattened view stays in bounds), pad channels, flatten spatial dims.
    x_nhwc = jnp.transpose(x_nchw, (0, 2, 3, 1))
    xp = jnp.pad(x_nhwc, ((0, 0), (p, p + 1), (p, p), (0, Cp - C)))
    flat_len = (H + 2 * p + 1) * Wp
    x_flat = xp.reshape(N, flat_len, Cp)

    scalars = jnp.stack([inv_delta_a, out_scale]).astype(jnp.float32)   # SMEM scalar prefetch

    # output-row tiling (v7x VMEM / pipelining / megacore): grid = (N, nT)
    TH = _pick_tile_rows(H_out, Wp, cap_rows=256)
    TM = TH * Wp
    nT = H_out // TH
    win = TM + (KH - 1) * Wp + (KW - 1)

    kernel = functools.partial(_fused_quant_conv_kernel, KH=KH, KW=KW, Wp=Wp, TM=TM,
                               OC=OC, op_dtype=op_dtype, acc_dtype=acc_dtype)

    # VMEM budget derived from the actual block sizes (+ headroom), not hardcoded to full VMEM.
    x_block = flat_len * Cp * 4
    w_bytes = Kc * OCp * op_bytes
    out_tile = TM * OC * 4
    scratch = win * Cp * 4 + TM * Kc * (4 + op_bytes) + TM * OCp * 4
    vmem_needed = 2 * x_block + w_bytes + OC * 4 + 2 * out_tile + scratch
    vmem_limit = int(min(2 * vmem_needed + (16 << 20), 48 << 20))

    cost = pl.CostEstimate(
        flops=2 * N * nT * TM * Kc * OCp,
        transcendentals=0,
        bytes_accessed=N * x_block + w_bytes + OC * 4 + N * M * OC * 4,
    )

    out_flat = pl.pallas_call(
        kernel,
        out_shape=jax.ShapeDtypeStruct((N, M, OC), jnp.float32),
        grid_spec=pltpu.PrefetchScalarGridSpec(
            num_scalar_prefetch=1,
            grid=(N, nT),
            in_specs=[
                # activation block: constant index over t -> stays resident, no re-DMA per tile
                pl.BlockSpec((1, flat_len, Cp), lambda n, t, s: (n, 0, 0)),
                pl.BlockSpec((Kc, OCp), lambda n, t, s: (0, 0)),      # resident weights
                pl.BlockSpec((1, OC), lambda n, t, s: (0, 0)),        # resident bias
            ],
            out_specs=pl.BlockSpec((1, TM, OC), lambda n, t, s: (n, t, 0)),
        ),
        compiler_params=pltpu.CompilerParams(
            dimension_semantics=("parallel", "arbitrary"),
            vmem_limit_bytes=vmem_limit,
        ),
        cost_estimate=cost,
    )(scalars, x_flat, w_r, bias_r)

    # drop garbage pseudo-columns, back to NCHW
    out = out_flat.reshape(N, H_out, Wp, OC)[:, :, :W_out, :]
    return jnp.transpose(out, (0, 3, 1, 2))


def fake_quant_conv2d_forward(x_nchw, weight, bias, *, padding=1, use_int8=None):
    """x_nchw: (N, C, H, W); weight: (OC, C, KH, KW); bias: (OC,). Returns NCHW f32 output."""
    if use_int8 is None:
        use_int8 = _int8_mxu_available()
    if not use_int8:
        return _forward_impl(x_nchw, weight, bias, padding=padding, use_int8=False)
    try:
        return _forward_impl(x_nchw, weight, bias, padding=padding, use_int8=True)
    except Exception:  # pragma: no cover
        # TODO(synk): conservative fallback if this device/toolchain rejects the int8 MXU path.
        return _forward_impl(x_nchw, weight, bias, padding=padding, use_int8=False)


if __name__ == "__main__":
    # Small shapes consistent with Conv2d(4 -> 8, kernel 3x3, stride 1, padding 1).
    N, C, H, W = 2, 4, 16, 16
    OC, KH, KW = 8, 3, 3

    key = jax.random.PRNGKey(0)
    kx, kw_, kb = jax.random.split(key, 3)
    x = jax.random.normal(kx, (N, C, H, W), dtype=jnp.float32)
    weight = jax.random.normal(kw_, (OC, C, KH, KW), dtype=jnp.float32) * 0.1
    bias = jax.random.normal(kb, (OC,), dtype=jnp.float32) * 0.01

    out = fake_quant_conv2d_forward(x, weight, bias, padding=1)
    out = jax.block_until_ready(out)
    assert out.shape == (N, OC, H, W)

    # Reference: same fake-quant of both operands, then f32 lax.conv.
    delta_w = _symmetric_delta(weight)
    w_fq = jnp.clip(jnp.round(weight / delta_w), -QMAX, QMAX) * delta_w
    delta_a = _symmetric_delta(x)
    x_fq = jnp.clip(jnp.round(x * (1.0 / delta_a)), -QMAX, QMAX) * delta_a
    ref = jax.lax.conv_general_dilated(
        x_fq, w_fq, window_strides=(1, 1), padding=((1, 1), (1, 1)),
        dimension_numbers=("NCHW", "OIHW", "NCHW"),
        precision=jax.lax.Precision.HIGHEST,
    ) + bias.reshape(1, OC, 1, 1)

    assert jnp.allclose(out, ref, atol=1e-3, rtol=1e-3), float(jnp.max(jnp.abs(out - ref)))
    print("KERNEL_OK")
</pallas_src>

<mosaic_0001>
module attributes {stable_mosaic.version = 11 : i64} {
  func.func @_fused_quant_conv_kernel(%arg0: i32, %arg1: i32, %arg2: memref<2xf32, #tpu.memory_space<smem>>, %arg3: memref<1x342x8xf32, #tpu.memory_space<vmem>>, %arg4: memref<72x128xbf16, #tpu.memory_space<vmem>>, %arg5: memref<1x8xf32, #tpu.memory_space<vmem>>, %arg6: memref<1x144x8xf32, #tpu.memory_space<vmem>>) attributes {dimension_semantics = [#tpu.dimension_semantics<parallel>, #tpu.dimension_semantics<arbitrary>], iteration_bounds = array<i64: 2, 2>, scalar_prefetch = 1 : i64, scratch_operands = 0 : i64, tpu.core_type = #tpu.core_type<tc>, window_params = [{transform_indices = @transform_0, window_bounds = array<i64: 1, 342, 8>}, {pipeline_mode = #tpu.pipeline_mode<synchronous>, transform_indices = @transform_1, window_bounds = array<i64: 72, 128>}, {pipeline_mode = #tpu.pipeline_mode<synchronous>, transform_indices = @transform_2, window_bounds = array<i64: 1, 8>}, {transform_indices = @transform_3, window_bounds = array<i64: 1, 144, 8>}]} {
    %c0 = arith.constant 0 : index
    %0 = memref.load %arg2[%c0] : memref<2xf32, #tpu.memory_space<smem>>
    %c1 = arith.constant 1 : index
    %1 = memref.load %arg2[%c1] : memref<2xf32, #tpu.memory_space<smem>>
    %c144_i32 = arith.constant 144 : i32
    %2 = arith.muli %arg1, %c144_i32 : i32
    %3 = tpu.assume_multiple %2, 8 : i32
    %c0_0 = arith.constant 0 : index
    %4 = arith.index_cast %3 : i32 to index
    %c0_1 = arith.constant 0 : index
    %5 = vector.load %arg3[%c0_0, %4, %c0_1] : memref<1x342x8xf32, #tpu.memory_space<vmem>>, vector<1x182x8xf32>
    %6 = vector.shape_cast %5 : vector<1x182x8xf32> to vector<182x8xf32>
    %7 = vector.broadcast %0 : f32 to vector<182x8xf32>
    %8 = arith.mulf %6, %7 : vector<182x8xf32>
    %9 = math.roundeven %8 : vector<182x8xf32>
    %cst = arith.constant -1.270000e+02 : f32
    %cst_2 = arith.constant 1.270000e+02 : f32
    %10 = vector.broadcast %cst : f32 to vector<182x8xf32>
    %11 = arith.maximumf %10, %9 : vector<182x8xf32>
    %12 = vector.broadcast %cst_2 : f32 to vector<182x8xf32>
    %13 = arith.minimumf %12, %11 : vector<182x8xf32>
    %14 = vector.extract_strided_slice %13 {offsets = [0, 0], sizes = [144, 8], strides = [1, 1]} : vector<182x8xf32> to vector<144x8xf32>
    %15 = vector.extract_strided_slice %13 {offsets = [1, 0], sizes = [144, 8], strides = [1, 1]} : vector<182x8xf32> to vector<144x8xf32>
    %16 = vector.extract_strided_slice %13 {offsets = [2, 0], sizes = [144, 8], strides = [1, 1]} : vector<182x8xf32> to vector<144x8xf32>
    %17 = vector.extract_strided_slice %13 {offsets = [18, 0], sizes = [144, 8], strides = [1, 1]} : vector<182x8xf32> to vector<144x8xf32>
    %18 = vector.extract_strided_slice %13 {offsets = [19, 0], sizes = [144, 8], strides = [1, 1]} : vector<182x8xf32> to vector<144x8xf32>
    %19 = vector.extract_strided_slice %13 {offsets = [20, 0], sizes = [144, 8], strides = [1, 1]} : vector<182x8xf32> to vector<144x8xf32>
    %20 = vector.extract_strided_slice %13 {offsets = [36, 0], sizes = [144, 8], strides = [1, 1]} : vector<182x8xf32> to vector<144x8xf32>
    %21 = vector.extract_strided_slice %13 {offsets = [37, 0], sizes = [144, 8], strides = [1, 1]} : vector<182x8xf32> to vector<144x8xf32>
    %22 = vector.extract_strided_slice %13 {offsets = [38, 0], sizes = [144, 8], strides = [1, 1]} : vector<182x8xf32> to vector<144x8xf32>
    %23 = tpu.concatenate %14, %15, %16, %17, %18, %19, %20, %21, %22 in 1 : vector<144x8xf32>, vector<144x8xf32>, vector<144x8xf32>, vector<144x8xf32>, vector<144x8xf32>, vector<144x8xf32>, vector<144x8xf32>, vector<144x8xf32>, vector<144x8xf32> -> vector<144x72xf32>
    %24 = arith.truncf %23 : vector<144x72xf32> to vector<144x72xbf16>
    %c0_3 = arith.constant 0 : index
    %c0_4 = arith.constant 0 : index
    %25 = vector.load %arg4[%c0_3, %c0_4] : memref<72x128xbf16, #tpu.memory_space<vmem>>, vector<72x128xbf16>
    %cst_5 = arith.constant dense<0.000000e+00> : vector<144x128xf32>
    %26 = tpu.matmul %24, %25, %cst_5 {dimension_numbers = #tpu.dot_dimension_numbers<[1], [0], [0], [1], [0, 0, 1, 1], [], []>} : vector<144x72xbf16>, vector<72x128xbf16>, vector<144x128xf32> -> vector<144x128xf32>
    %27 = vector.extract_strided_slice %26 {offsets = [0, 0], sizes = [144, 8], strides = [1, 1]} : vector<144x128xf32> to vector<144x8xf32>
    %28 = vector.broadcast %1 : f32 to vector<144x8xf32>
    %29 = arith.mulf %27, %28 : vector<144x8xf32>
    %c0_6 = arith.constant 0 : index
    %c0_7 = arith.constant 0 : index
    %30 = vector.load %arg5[%c0_6, %c0_7] : memref<1x8xf32, #tpu.memory_space<vmem>>, vector<1x8xf32>
    %31 = vector.broadcast %30 : vector<1x8xf32> to vector<144x8xf32>
    %32 = arith.addf %29, %31 : vector<144x8xf32>
    %c0_8 = arith.constant 0 : index
    %c0_9 = arith.constant 0 : index
    %c0_10 = arith.constant 0 : index
    %33 = vector.load %arg6[%c0_8, %c0_9, %c0_10] : memref<1x144x8xf32, #tpu.memory_space<vmem>>, vector<1x144x8xf32>
    %34 = vector.shape_cast %33 : vector<1x144x8xf32> to vector<144x8xf32>
    %35 = vector.shape_cast %32 : vector<144x8xf32> to vector<1x144x8xf32>
    tpu.vector_store %arg6[%c0_8, %c0_9, %c0_10], %35 {strides = array<i32>} : memref<1x144x8xf32, #tpu.memory_space<vmem>>, vector<1x144x8xf32>,
    return
  }
  func.func @transform_0(%arg0: i32, %arg1: i32, %arg2: memref<2xf32, #tpu.memory_space<smem>>) -> (i32, i32, i32) {
    %c0_i32 = arith.constant 0 : i32
    %c0_i32_0 = arith.constant 0 : i32
    %c0_i32_1 = arith.constant 0 : i32
    return %arg0, %c0_i32, %c0_i32_0 : i32, i32, i32
  }
  func.func @transform_1(%arg0: i32, %arg1: i32, %arg2: memref<2xf32, #tpu.memory_space<smem>>) -> (i32, i32) {
    %c0_i32 = arith.constant 0 : i32
    %c0_i32_0 = arith.constant 0 : i32
    %c0_i32_1 = arith.constant 0 : i32
    return %c0_i32, %c0_i32_0 : i32, i32
  }
  func.func @transform_2(%arg0: i32, %arg1: i32, %arg2: memref<2xf32, #tpu.memory_space<smem>>) -> (i32, i32) {
    %c0_i32 = arith.constant 0 : i32
    %c0_i32_0 = arith.constant 0 : i32
    %c0_i32_1 = arith.constant 0 : i32
    return %c0_i32, %c0_i32_0 : i32, i32
  }
  func.func @transform_3(%arg0: i32, %arg1: i32, %arg2: memref<2xf32, #tpu.memory_space<smem>>) -> (i32, i32, i32) {
    %c0_i32 = arith.constant 0 : i32
    %c0_i32_0 = arith.constant 0 : i32
    return %arg0, %arg1, %c0_i32 : i32, i32, i32
  }
}

</mosaic_0001>

<bundles_post_ra>
// kernel: tpu_custom_call.1
= control target key start
LH: loop header
LB: loop body
LE: loop exit
PB: predicated region body
PF: predicated region fallthrough
CT: control target
= control target key end

     0   :  { %s3153_s0 = inlined_call_operand.vmem [shape: f32[2], index: 0, kind: input, shape index: {}]   ;;  %s3154_s1 = inlined_call_operand.vmem [shape: f32[2,342,8], index: 1, kind: input, shape index: {}]   ;;  %s3155_s2 = inlined_call_operand.vmem [shape: bf16[72,128], index: 2, kind: input, shape index: {}]   ;;  %s3156_s3 = inlined_call_operand.vmem [shape: f32[1,8], index: 3, kind: input, shape index: {}]   ;;  %s3157_s4 = inlined_call_operand.vmem [shape: f32[2,288,8], index: 4, kind: output, shape index: {}]  }
   0x1   :  { %s9_s17 = sshll.u32 %s3153_s0, 4  ;;  %s10_s17 = int_to_ptr.vmem [resolvable:$true] %s9_s17 }
   0x2   :  { %s2053_s18 = scalar_lea.vmem %s10_s17, 16  ;;  %p2058_p1 = scmp.lt.s32.totalorder %s10_s17, %s10_s17 }
   0x3   :  { %p2054_p0 = scmp.ne.s32.totalorder %s10_s17, %s2053_s18  ;;  %p2059_p2 = scmp.lt.s32.totalorder %s2053_s18, %s2053_s18 }
   0x5   :  { %p2060_p3 = por %p2059_p2, %p2058_p1 }
   0x7   :  { %p2061_p4 = pnand %p2060_p3, %p2054_p0 }
   0x9   :  { %2064 = shalt.err (!%p2061_p4)  }
   0xa   :  { %s2107_s19 = smov [#allocation3]  }
   0xb   :  { %12 = dma.vmem_to_smem %s10_s17, 16, %s2107_s19, [#allocation2] }
   0xc   :  { %2085 = dma.done.wait [#allocation2], 16 }
   0xd   :  { %2086 = vsyncadd [#allocation2], 4294967280 }
   0xe   :  { %14 = sfence }
   0xf   :  { %s2146_s20 = smov 0   ;;  %s2148_s21 = smov 0  }
  0x10   :  { %s2150_s22 = smov 0   ;;  %s2152_s0 = smov 0  }
  0x11   :  { %s2154_s23 = smov 0  }
  0x12 LB: > { %s29_s24 = sadd.s32 1, %s2097_s22  ;;  %s32_s25 = sadd.s32 1, %s2101_s0  ;;  %s2105_s23 = sphi %s2154_s23, %s20_s23   ;;  %s2101_s0 = sphi %s2152_s0, %s3161_s0   ;;  %s2097_s22 = sphi %s2150_s22, %s3160_s22   ;;  %s2093_s21 = sphi %s2148_s21, %s3159_s21   ;;  %s2089_s20 = sphi %s2146_s20, %s3158_s20  }
  0x13   : > { %p30_p5 = scmp.ge.s32.totalorder %s29_s24, 2  ;;  %p1498_p6 = scmp.ge.s32.totalorder %s2105_s23, 1 }
  0x14   : > { %p158_p7 = scmp.lt.s32.totalorder %s2105_s23, 5 }
  0x15   : > { %s3163_s24 = smov (%p30_p5, %s29_s24), 0  ;;  %s3165_s25 = smov (!%p30_p5, %s32_s25), %s2101_s0 }
  0x16   : > { %p159_p8 = pnand %p1498_p6, %p158_p7  ;;  %p34_p9 = scmp.ge.s32.totalorder %s3165_s25, 2 }
  0x17   : > { %p186_p10 = scmp.lt.s32.totalorder (!%p159_p8), %s2093_s21, 1  ;;  %s202_s26 = sld [smem:[#allocation3]] (!%p159_p8)  ;;  %v2048_v0 = vld [vmem:[%s3155_s2] sm:$0xff] (!%p159_p8)   ;;  %v2108_v2 = vmov (!%p159_p8), 0.0   ;;  %vm433_vm0 = vcmask (!%p159_p8), 1045504   ;;  %vm341_vm1 = vcmask (!%p159_p8), 1046528  }
  0x18   : > { %s3167_s25 = smov (%p34_p9, %s3165_s25), 0  ;;  %162 = sbr.rel (%p159_p8) target bundleno = 528 (0x210), region = 32 }
  0x19   : > { %s204_s27 = smul.u32 (!%p159_p8), 144, %s2089_s20  ;;  %1556 = vmatprep.subr.bf16.mxu0 (!%p159_p8), %v2108_v2  ;;  %1602 = vmatprep.subr.bf16.mxu1 (!%p159_p8), %v2108_v2  ;;  %vm585_vm2 = vcmask (!%p159_p8), 1044480   ;;  %vm677_vm3 = vcmask (!%p159_p8), 1043456   ;;  %vm921_vm4 = vcmask (!%p159_p8), 1041408   ;;  %vm829_vm5 = vcmask (!%p159_p8), 1042432   ;;  %v2049_v37 = vld [vmem:[%s3155_s2 + $0x8] sm:$0xff] (!%p159_p8)  }
  0x1a   : > { %1557 = vmatpush3.bf16.msra.mxu0 (!%p159_p8), %v2048_v0  ;;  %1607 = vmatpush3.bf16.msra.mxu1 (!%p159_p8), %v2048_v0  ;;  %v2050_v46 = vld [vmem:[%s3155_s2 + $0x10] sm:$0xff] (!%p159_p8)   ;;  %s2109_s13 = smov (!%p159_p8), 24   ;;  %s2110_s14 = smov (!%p159_p8), 8   ;;  %v2051_v63 = vld [vmem:[%s3155_s2 + $0x18] sm:$0xff] (!%p159_p8)   ;;  %vm2117_vm6 = vmmov (!%p159_p8), 0   ;;  %vm1013_vm7 = vcmask (!%p159_p8), 64512  }
  0x1b   : > { %1558 = vmatprep.subr.bf16.mxu0 (!%p159_p8), %v2108_v2  ;;  %1603 = vmatprep.subr.bf16.mxu1 (!%p159_p8), %v2108_v2  ;;  %s2111_s17 = smov (!%p159_p8), 32   ;;  %s2112_s18 = smov (!%p159_p8), 16   ;;  %vm1032_vm8 = vcmask (!%p159_p8), 130048   ;;  %vm1051_vm9 = vcmask (!%p159_p8), 195584   ;;  %vm1070_vm10 = vcmask (!%p159_p8), 261120   ;;  %vm1089_vm11 = vcmask (!%p159_p8), 326656  }
  0x1c   : > { %s2113_s19 = smov (!%p159_p8), 48   ;;  %1566 = vmatprep.mubr.msk.bf16.mxu0 (!%p159_p8), %vm2117_vm6, %v2108_v2  ;;  %1586 = vmatprep.mubr.msk.bf16.mxu1 (!%p159_p8), %vm2117_vm6, %v2108_v2  ;;  %vm1108_vm12 = vcmask (!%p159_p8), 392192   ;;  %vm1127_vm13 = vcmask (!%p159_p8), 457728   ;;  %vm1146_vm14 = vcmask (!%p159_p8), 523264   ;;  %vm1210_vm15 = vcmask (!%p159_p8), 588800   ;;  %s191_s5 = smul.u32 (!%p159_p8), 18, %s2089_s20 }
  0x1d   : > { %v2188_v1 = vstv (!%p159_p8), %s202_s26  ;;  %s2114_s26 = smov (!%p159_p8), 40   ;;  %s1501_s6 = sld [smem:[#allocation3 + $0x1]] (!%p159_p8) }
  0x1e   : > { %1559 = vmatpush3.bf16.msra.mxu0 (!%p159_p8), %v2049_v37  ;;  %1608 = vmatpush3.bf16.msra.mxu1 (!%p159_p8), %v2049_v37  ;;  %p194_p11 = scmp.lt.s32.totalorder (!%p159_p8), %s191_s5, 35 }
  0x1f   : > { %s3169_s21 = smov (!%p186_p10, %s2093_s21), 1  ;;  %1560 = vmatprep.subr.bf16.mxu0 %v2108_v2  ;;  %1604 = vmatprep.subr.bf16.mxu1 %v2108_v2 }
  0x20   : > { %s1612_s28 = smul.u32 344, %s3169_s21  ;;  %s3171_s5 = smov (!%p194_p11, %s191_s5), 35 }
  0x22   : > { %s190_s7 = scalar_lea.vmem %s3154_s1, %s1612_s28  ;;  %1561 = vmatpush3.bf16.msra.mxu0 %v2050_v46  ;;  %1609 = vmatpush3.bf16.msra.mxu1 %v2050_v46  ;;  %s2116_s28 = smov 56  }
  0x23   : > { %s2192_s8 = scalar_lea.vmem %s190_s7, %s204_s27  ;;  %1562 = vmatprep.subr.bf16.mxu0 %v2108_v2  ;;  %1605 = vmatprep.subr.bf16.mxu1 %v2108_v2  ;;  %s2115_s27 = smov 64  }
  0x24   : > { %v208_v3 = vld [vmem:[%s2192_s8 + $0x10] sm:$0xff]  ;;  %v209_v4 = vld [vmem:[%s2192_s8 + $0x18] sm:$0xff]  ;;  %v210_v5 = vld [vmem:[%s2192_s8 + $0x20] sm:$0xff]  ;;  %s1613_s7 = smul.u32 36, %s3169_s21 }
  0x25   : > { %v232_v6 = vmul.f32 %v2188_v1, %v208_v3  ;;  %v233_v7 = vmul.f32 %v2188_v1, %v209_v4  ;;  %v234_v8 = vmul.f32 %v2188_v1, %v210_v5  ;;  %v206_v9 = vld [vmem:[%s2192_s8] sm:$0xff]  ;;  %v207_v10 = vld [vmem:[%s2192_s8 + $0x8] sm:$0xff]  ;;  %v212_v14 = vld [vmem:[%s2192_s8 + $0x30] sm:$0xff] }
  0x26   : > { %v211_v11 = vld [vmem:[%s2192_s8 + $0x28] sm:$0xff]  ;;  %v230_v12 = vmul.f32 %v2188_v1, %v206_v9  ;;  %v231_v13 = vmul.f32 %v2188_v1, %v207_v10  ;;  %v216_v16 = vld [vmem:[%s2192_s8 + $0x50] sm:$0xff]  ;;  %v236_v20 = vmul.f32 %v2188_v1, %v212_v14  ;;  %v217_v36 = vld [vmem:[%s2192_s8 + $0x58] sm:$0xff]  ;;  %1563 = vmatpush3.bf16.msra.mxu0 %v2051_v63  ;;  %1610 = vmatpush3.bf16.msra.mxu1 %v2051_v63 }
  0x27   : > { %v235_v15 = vmul.f32 %v2188_v1, %v211_v11  ;;  %v1616_v17 = vround.rtne.f32 %v232_v6  ;;  %v1617_v18 = vround.rtne.f32 %v233_v7  ;;  %v1618_v19 = vround.rtne.f32 %v234_v8  ;;  %v218_v10 = vld [vmem:[%s2192_s8 + $0x60] sm:$0xff]  ;;  %1564 = vmatprep.subr.bf16.mxu0 %v2108_v2  ;;  %1606 = vmatprep.subr.bf16.mxu1 %v2108_v2 }
  0x28   : > { %v1614_v21 = vround.rtne.f32 %v230_v12  ;;  %v1615_v22 = vround.rtne.f32 %v231_v13  ;;  %v2218_v27 = vmul.f32 %v2188_v1, %v216_v16  ;;  %v1620_v30 = vround.rtne.f32 %v236_v20 }
  0x29   : > { %v1619_v23 = vround.rtne.f32 %v235_v15  ;;  %v2211_v24 = vclamps-f32 %v1616_v17, 127.0  ;;  %v2213_v25 = vclamps-f32 %v1617_v18, 127.0  ;;  %v2215_v26 = vclamps-f32 %v1618_v19, 127.0  ;;  %v219_v19 = vld [vmem:[%s2192_s8 + $0x68] sm:$0xff] }
  0x2a   : > { %v2220_v28 = vclamps-f32 %v1614_v21, 127.0  ;;  %v2222_v29 = vclamps-f32 %v1615_v22, 127.0  ;;  %v2254_v50 = vmul.f32 %v2188_v1, %v217_v36  ;;  %v2265_v56 = vclamps-f32 %v1620_v30, 127.0  ;;  %v220_v30 = vld [vmem:[%s2192_s8 + $0x70] sm:$0xff] }
  0x2b   : > { %v2224_v31 = vclamps-f32 %v1619_v23, 127.0  ;;  %v437_v32 = vrot.slane %v2211_v24, 2  ;;  %v439_v33 = vrot.slane %v2213_v25, 2  ;;  %v441_v34 = vrot.slane %v2215_v26, 2 }
  0x2c   : > { %v345_v35 = vrot.slane %v2211_v24, 1  ;;  %v342_v38 = vrot.slane %v2220_v28, 1  ;;  %v343_v39 = vrot.slane %v2222_v29, 1  ;;  %v586_v40 = vrot.slane %v2211_v24, 3 }
  0x2d   : > { %v587_v41 = vrot.slane %v2213_v25, 3  ;;  %v440_v42 = vsel %vm433_vm0, %v437_v32, %v439_v33  ;;  %v442_v43 = vsel %vm433_vm0, %v439_v33, %v441_v34  ;;  %v589_v44 = vrot.slane %v2215_v26, 3 }
  0x2e   : > { %v434_v45 = vrot.slane %v2220_v28, 2  ;;  %v2247_v47 = vpack.i.bf16 %v442_v43, %v440_v42  ;;  %v344_v48 = vsel %vm341_vm1, %v342_v38, %v343_v39  ;;  %v346_v49 = vsel %vm341_vm1, %v343_v39, %v345_v35 }
  0x2f   : > { %v1688_v51 = vpack.i.bf16 %v346_v49, %v344_v48  ;;  %v588_v52 = vsel %vm585_vm2, %v586_v40, %v587_v41  ;;  %v590_v53 = vsel %vm585_vm2, %v587_v41, %v589_v44  ;;  %v435_v54 = vrot.slane %v2222_v29, 2 }
  0x30   : > { %1699 = vrot.lane.b32.xlu1 %v2247_v47, %s2109_s13  ;;  %v1703_v55 = vpack.i.bf16 %v590_v53, %v588_v52  ;;  %v681_v57 = vrot.slane %v2215_v26, 4  ;;  %v683_v58 = vrot.slane %v2224_v31, 4  ;;  %v678_v61 = vrot.slane %v2211_v24, 4 }
  0x31   : > { %1689 = vrot.lane.b32.xlu0 %v1688_v51, %s2110_s14  ;;  %v436_v59 = vsel %vm433_vm0, %v434_v45, %v435_v54  ;;  %v438_v60 = vsel %vm433_vm0, %v435_v54, %v437_v32  ;;  %v679_v62 = vrot.slane %v2213_v25, 4  ;;  %v685_v4 = vrot.slane %v2265_v56, 4 }
  0x32   : > { %v1693_v0 = vpack.i.bf16 %v438_v60, %v436_v59  ;;  %v684_v3 = vsel %vm677_vm3, %v681_v57, %v683_v58  ;;  %v922_v5 = vrot.slane %v2215_v26, 6  ;;  %v923_v8 = vrot.slane %v2224_v31, 6 }
  0x33   : > { %v680_v6 = vsel %vm677_vm3, %v678_v61, %v679_v62  ;;  %v682_v7 = vsel %vm677_vm3, %v679_v62, %v681_v57  ;;  %v925_v9 = vrot.slane %v2265_v56, 6  ;;  %v686_v11 = vsel %vm677_vm3, %v683_v58, %v685_v4 }
  0x34   : > { %1704 = vrot.lane.b32.xlu1 %v1703_v55, %s2111_s17  ;;  %v1708_v12 = vpack.i.bf16 %v682_v7, %v680_v6  ;;  %v830_v13 = vrot.slane %v2215_v26, 5  ;;  %v831_v14 = vrot.slane %v2224_v31, 5  ;;  %v2294_v15 = vpack.i.bf16 %v686_v11, %v684_v3 }
  0x35   : > { %1694 = vrot.lane.b32.xlu0 %v1693_v0, %s2112_s18  ;;  %v924_v16 = vsel %vm921_vm4, %v922_v5, %v923_v8  ;;  %v926_v17 = vsel %vm921_vm4, %v923_v8, %v925_v9  ;;  %v833_v18 = vrot.slane %v2265_v56, 5  ;;  %v242_v22 = vmul.f32 %v2188_v1, %v218_v10 }
  0x36   : > { %v1723_v20 = vpack.i.bf16 %v926_v17, %v924_v16  ;;  %v832_v21 = vsel %vm829_vm5, %v830_v13, %v831_v14  ;;  %v1624_v23 = vround.rtne.f32 %v2218_v27  ;;  %v1625_v33 = vround.rtne.f32 %v2254_v50 }
  0x37   : > { %v834_v32 = vsel %vm829_vm5, %v831_v14, %v833_v18  ;;  %v347_v36 = vrot.slane %v2213_v25, 1  ;;  %v349_v37 = vrot.slane %v2215_v26, 1  ;;  %v1626_v38 = vround.rtne.f32 %v242_v22 }
  0x38   : > { %1714 = vrot.lane.b32.xlu1 %v2294_v15, %s2113_s19  ;;  %v1718_v27 = vpack.i.bf16 %v834_v32, %v832_v21  ;;  %v2316_v39 = vclamps-f32 %v1624_v23, 127.0  ;;  %v243_v40 = vmul.f32 %v2188_v1, %v219_v19  ;;  %v2320_v41 = vclamps-f32 %v1625_v33, 127.0  ;;  %v221_v19 = vld [vmem:[%s2192_s8 + $0x78] sm:$0xff] }
  0x39   : > { %1709 = vrot.lane.b32.xlu0 %v1708_v12, %s2114_s26  ;;  %v348_v42 = vsel %vm341_vm1, %v345_v35, %v347_v36  ;;  %v350_v43 = vsel %vm341_vm1, %v347_v36, %v349_v37  ;;  %v244_v45 = vmul.f32 %v2188_v1, %v220_v30  ;;  %v2329_v46 = vclamps-f32 %v1626_v38, 127.0  ;;  %v213_v21 = vld [vmem:[%s2192_s8 + $0x38] sm:$0xff]  ;;  %v214_v30 = vld [vmem:[%s2192_s8 + $0x40] sm:$0xff] }
  0x3a   : > { %v361_v48 = vrot.slane %v2316_v39, 1  ;;  %v1728_v49 = vpack.i.bf16 %v350_v43, %v348_v42  ;;  %v453_v50 = vrot.slane %v2316_v39, 2  ;;  %v363_v51 = vrot.slane %v2320_v41, 1 }
  0x3b   : > { %v455_v52 = vrot.slane %v2320_v41, 2  ;;  %v1627_v53 = vround.rtne.f32 %v243_v40  ;;  %v1628_v54 = vround.rtne.f32 %v244_v45  ;;  %v365_v35 = vrot.slane %v2329_v46, 1 }
  0x3c   : > { %1724 = vrot.lane.b32.xlu1 %v1723_v20, %s2115_s27  ;;  %v457_v55 = vrot.slane %v2329_v46, 2  ;;  %v443_v57 = vrot.slane %v2224_v31, 2  ;;  %v445_v58 = vrot.slane %v2265_v56, 2  ;;  %v364_v59 = vsel %vm341_vm1, %v361_v48, %v363_v51  ;;  %v222_v20 = vld [vmem:[%s2192_s8 + $0x80] sm:$0xff] }
  0x3d   : > { %1719 = vrot.lane.b32.xlu0 %v1718_v27, %s2116_s28  ;;  %v456_v60 = vsel %vm433_vm0, %v453_v50, %v455_v52  ;;  %v2347_v61 = vclamps-f32 %v1627_v53, 127.0  ;;  %v2349_v62 = vclamps-f32 %v1628_v54, 127.0  ;;  %v366_v63 = vsel %vm341_vm1, %v363_v51, %v365_v35 }
  0x3e   : > { %v458_v0 = vsel %vm433_vm0, %v455_v52, %v457_v55  ;;  %v444_v3 = vsel %vm433_vm0, %v441_v34, %v443_v57  ;;  %v1733_v5 = vpack.i.bf16 %v366_v63, %v364_v59  ;;  %v446_v8 = vsel %vm433_vm0, %v443_v57, %v445_v58 }
  0x3f   : > { %v459_v6 = vrot.slane %v2347_v61, 2  ;;  %v461_v7 = vrot.slane %v2349_v62, 2  ;;  %v2363_v10 = vpack.i.bf16 %v458_v0, %v456_v60  ;;  %v605_v11 = vrot.slane %v2329_v46, 3 }
  0x40   : > { %v607_v12 = vrot.slane %v2347_v61, 3  ;;  %v609_v34 = vrot.slane %v2349_v62, 3  ;;  %1734 = vrot.lane.b32.xlu1 %v1733_v5, %s2110_s14  ;;  %v591_v16 = vrot.slane %v2224_v31, 3  ;;  %v593_v17 = vrot.slane %v2265_v56, 3 }
  0x41   : > { %1729 = vrot.lane.b32.xlu0 %v1728_v49, %s2110_s14  ;;  %v460_v13 = vsel %vm433_vm0, %v457_v55, %v459_v6  ;;  %v462_v14 = vsel %vm433_vm0, %v459_v6, %v461_v7  ;;  %v2381_v23 = vpack.i.bf16 %v446_v8, %v444_v3  ;;  %v245_v27 = vmul.f32 %v2188_v1, %v221_v19 }
  0x42   : > { %v2379_v22 = vpack.i.bf16 %v462_v14, %v460_v13  ;;  %v608_v32 = vsel %vm585_vm2, %v605_v11, %v607_v12  ;;  %v610_v33 = vsel %vm585_vm2, %v607_v12, %v609_v34  ;;  %v592_v36 = vsel %vm585_vm2, %v589_v44, %v591_v16 }
  0x43   : > { %v594_v38 = vsel %vm585_vm2, %v591_v16, %v593_v17  ;;  %v697_v40 = vrot.slane %v2329_v46, 4  ;;  %v246_v42 = vmul.f32 %v2188_v1, %v222_v20  ;;  %v237_v43 = vmul.f32 %v2188_v1, %v213_v21 }
  0x44   : > { %1744 = vrot.lane.b32.xlu1 %v2363_v10, %s2112_s18  ;;  %v699_v44 = vrot.slane %v2347_v61, 4  ;;  %v701_v45 = vrot.slane %v2349_v62, 4  ;;  %v1629_v49 = vround.rtne.f32 %v245_v27  ;;  %v238_v51 = vmul.f32 %v2188_v1, %v214_v30 }
  0x45   : > { %1739 = vrot.lane.b32.xlu0 %v2247_v47, %s2112_s18  ;;  %v1630_v52 = vround.rtne.f32 %v246_v42  ;;  %v1621_v53 = vround.rtne.f32 %v237_v43  ;;  %v1763_v55 = vpack.i.bf16 %v610_v33, %v608_v32  ;;  %v1758_v57 = vpack.i.bf16 %v594_v38, %v592_v36 }
  0x46   : > { %v2407_v47 = vclamps-f32 %v1629_v49, 127.0  ;;  %v1622_v54 = vround.rtne.f32 %v238_v51  ;;  %v700_v63 = vsel %vm677_vm3, %v697_v40, %v699_v44  ;;  %v702_v0 = vsel %vm677_vm3, %v699_v44, %v701_v45 }
  0x47   : > { %v2413_v59 = vclamps-f32 %v1630_v52, 127.0  ;;  %v2415_v60 = vclamps-f32 %v1621_v53, 127.0  ;;  %v849_v13 = vrot.slane %v2349_v62, 5  ;;  %v2431_v16 = vpack.i.bf16 %v702_v0, %v700_v63 }
  0x48   : > { %1754 = vrot.lane.b32.xlu1 %v2379_v22, %s2109_s13  ;;  %v703_v3 = vrot.slane %v2407_v47, 4  ;;  %v2422_v5 = vclamps-f32 %v1622_v54, 127.0  ;;  %v851_v14 = vrot.slane %v2407_v47, 5  ;;  %v941_v38 = vrot.slane %v2349_v62, 6 }
  0x49   : > { %1749 = vrot.lane.b32.xlu0 %v2381_v23, %s2109_s13  ;;  %v705_v6 = vrot.slane %v2413_v59, 4  ;;  %v687_v8 = vrot.slane %v2415_v60, 4  ;;  %v853_v20 = vrot.slane %v2413_v59, 5  ;;  %v835_v21 = vrot.slane %v2415_v60, 5 }
  0x4a   : > { %v689_v12 = vrot.slane %v2422_v5, 4  ;;  %v704_v19 = vsel %vm677_vm3, %v701_v45, %v703_v3  ;;  %v837_v36 = vrot.slane %v2422_v5, 5  ;;  %v852_v27 = vsel %vm829_vm5, %v849_v13, %v851_v14 }
  0x4b   : > { %v706_v30 = vsel %vm677_vm3, %v703_v3, %v705_v6  ;;  %v688_v32 = vsel %vm677_vm3, %v685_v4, %v687_v8  ;;  %v943_v42 = vrot.slane %v2407_v47, 6  ;;  %v854_v44 = vsel %vm829_vm5, %v851_v14, %v853_v20 }
  0x4c   : > { %1764 = vrot.lane.b32.xlu1 %v1763_v55, %s2111_s17  ;;  %v690_v33 = vsel %vm677_vm3, %v687_v8, %v689_v12  ;;  %v2455_v4 = vpack.i.bf16 %v706_v30, %v704_v19  ;;  %v945_v45 = vrot.slane %v2413_v59, 6  ;;  %v836_v49 = vsel %vm829_vm5, %v833_v18, %v835_v21 }
  0x4d   : > { %1759 = vrot.lane.b32.xlu0 %v1758_v57, %s2111_s17  ;;  %v2457_v43 = vpack.i.bf16 %v690_v33, %v688_v32  ;;  %v838_v51 = vsel %vm829_vm5, %v835_v21, %v837_v36  ;;  %v929_v52 = vrot.slane %v2422_v5, 6  ;;  %v367_v53 = vrot.slane %v2347_v61, 1 }
  0x4e   : > { %v369_v54 = vrot.slane %v2349_v62, 1  ;;  %v1793_v55 = vpack.i.bf16 %v854_v44, %v852_v27  ;;  %v1788_v18 = vpack.i.bf16 %v838_v51, %v836_v49  ;;  %v351_v57 = vrot.slane %v2224_v31, 1  ;;  %v223_v27 = vld [vmem:[%s2192_s8 + $0x88] sm:$0xff] }
  0x4f   : > { %v353_v63 = vrot.slane %v2265_v56, 1  ;;  %v944_v0 = vsel %vm921_vm4, %v941_v38, %v943_v42  ;;  %v946_v3 = vsel %vm921_vm4, %v943_v42, %v945_v45  ;;  %v368_v30 = vsel %vm341_vm1, %v365_v35, %v367_v53  ;;  %v224_v42 = vld [vmem:[%s2192_s8 + $0x90] sm:$0xff]  ;;  %v215_v44 = vld [vmem:[%s2192_s8 + $0x48] sm:$0xff] }
  0x50   : > { %1774 = vrot.lane.b32.xlu1 %v2431_v16, %s2114_s26  ;;  %v1803_v19 = vpack.i.bf16 %v946_v3, %v944_v0  ;;  %v370_v32 = vsel %vm341_vm1, %v367_v53, %v369_v54  ;;  %v463_v49 = vrot.slane %v2407_v47, 2  ;;  %v447_v53 = vrot.slane %v2415_v60, 2 }
  0x51   : > { %1769 = vrot.lane.b32.xlu0 %v2294_v15, %s2114_s26  ;;  %v927_v15 = vrot.slane %v2415_v60, 6  ;;  %v354_v33 = vsel %vm341_vm1, %v351_v57, %v353_v63  ;;  %v1813_v35 = vpack.i.bf16 %v370_v32, %v368_v30  ;;  %v611_v3 = vrot.slane %v2407_v47, 3 }
  0x52   : > { %v464_v0 = vsel %vm433_vm0, %v461_v7, %v463_v49  ;;  %v597_v7 = vrot.slane %v2422_v5, 3 }
  0x53   : > { %v928_v8 = vsel %vm921_vm4, %v925_v9, %v927_v15  ;;  %v930_v14 = vsel %vm921_vm4, %v927_v15, %v929_v52  ;;  %v352_v9 = vsel %vm341_vm1, %v349_v37, %v351_v57  ;;  %v465_v15 = vrot.slane %v2413_v59, 2 }
  0x54   : > { %1784 = vrot.lane.b32.xlu1 %v2455_v4, %s2113_s19  ;;  %v1798_v21 = vpack.i.bf16 %v930_v14, %v928_v8  ;;  %v1808_v51 = vpack.i.bf16 %v354_v33, %v352_v9  ;;  %v449_v37 = vrot.slane %v2422_v5, 2  ;;  %v239_v57 = vmul.f32 %v2188_v1, %v215_v44 }
  0x55   : > { %1779 = vrot.lane.b32.xlu0 %v2457_v43, %s2113_s19  ;;  %v613_v8 = vrot.slane %v2413_v59, 3  ;;  %v466_v14 = vsel %vm433_vm0, %v463_v49, %v465_v15 }
  0x56   : > { %v450_v30 = vsel %vm433_vm0, %v447_v53, %v449_v37  ;;  %v1623_v33 = vround.rtne.f32 %v239_v57  ;;  %v693_v57 = vrot.slane %v2316_v39, 4 }
  0x57   : > { %v614_v44 = vsel %vm585_vm2, %v611_v3, %v613_v8 }
  0x58   : > { %1794 = vrot.lane.b32.xlu1 %v1793_v55, %s2116_s28  ;;  %v247_v55 = vmul.f32 %v2188_v1, %v223_v27  ;;  %v2535_v27 = vpack.i.bf16 %v466_v14, %v464_v0 }
  0x59   : > { %1789 = vrot.lane.b32.xlu0 %v1788_v18, %s2116_s28  ;;  %v248_v18 = vmul.f32 %v2188_v1, %v224_v42  ;;  %v612_v42 = vsel %vm585_vm2, %v609_v34, %v611_v3 }
  0x5a   : > { %v1631_v32 = vround.rtne.f32 %v247_v55 }
  0x5b   : > { %v1632_v9 = vround.rtne.f32 %v248_v18 }
  0x5c   : > { %1804 = vrot.lane.b32.xlu1 %v1803_v19, %s2115_s27  ;;  %v448_v19 = vsel %vm433_vm0, %v445_v58, %v447_v53 }
  0x5d   : > { %1799 = vrot.lane.b32.xlu0 %v1798_v21, %s2115_s27  ;;  %v595_v21 = vrot.slane %v2415_v60, 3  ;;  %v2544_v58 = vpack.i.bf16 %v450_v30, %v448_v19  ;;  %v841_v19 = vrot.slane %v2316_v39, 5 }
  0x5f   : > { %v596_v49 = vsel %vm585_vm2, %v593_v17, %v595_v21  ;;  %v598_v34 = vsel %vm585_vm2, %v595_v21, %v597_v7 }
  0x60   : > { %1814 = vrot.lane.b32.xlu1 %v1813_v35, %s2110_s14  ;;  %v2555_v35 = vclamps-f32 %v1631_v32, 127.0  ;;  %v1838_v53 = vpack.i.bf16 %v598_v34, %v596_v49 }
  0x61   : > { %1809 = vrot.lane.b32.xlu0 %v1808_v51, %s2110_s14  ;;  %v2559_v51 = vclamps-f32 %v1623_v33, 127.0 }
  0x62   : > { %v707_v17 = vrot.slane %v2555_v35, 4  ;;  %v855_v0 = vrot.slane %v2555_v35, 5  ;;  %v947_v33 = vrot.slane %v2555_v35, 6 }
  0x63   : > { %v691_v18 = vrot.slane %v2559_v51, 4  ;;  %v839_v14 = vrot.slane %v2559_v51, 5 }
  0x64   : > { %1824 = vrot.lane.b32.xlu1 %v2379_v22, %s2112_s18  ;;  %v2557_v22 = vclamps-f32 %v1632_v9, 127.0  ;;  %v708_v21 = vsel %vm677_vm3, %v705_v6, %v707_v17 }
  0x65   : > { %1819 = vrot.lane.b32.xlu0 %v2381_v23, %s2112_s18  ;;  %v1843_v23 = vpack.i.bf16 %v614_v44, %v612_v42  ;;  %v692_v32 = vsel %vm677_vm3, %v689_v12, %v691_v18  ;;  %v694_v9 = vsel %vm677_vm3, %v691_v18, %v693_v57  ;;  %v933_v42 = vrot.slane %v2316_v39, 6 }
  0x66   : > { %v709_v55 = vrot.slane %v2557_v22, 4  ;;  %v857_v3 = vrot.slane %v2557_v22, 5  ;;  %v2595_v44 = vpack.i.bf16 %v694_v9, %v692_v32  ;;  %v856_v12 = vsel %vm829_vm5, %v853_v20, %v855_v0 }
  0x67   : > { %v949_v49 = vrot.slane %v2557_v22, 6  ;;  %v373_v20 = vrot.slane %v2413_v59, 1 }
  0x68   : > { %1834 = vrot.lane.b32.xlu1 %v2535_v27, %s2109_s13  ;;  %v710_v30 = vsel %vm677_vm3, %v707_v17, %v709_v55  ;;  %v858_v34 = vsel %vm829_vm5, %v855_v0, %v857_v3  ;;  %v357_v0 = vrot.slane %v2422_v5, 1 }
  0x69   : > { %1829 = vrot.lane.b32.xlu0 %v2544_v58, %s2109_s13  ;;  %v2593_v6 = vpack.i.bf16 %v710_v30, %v708_v21  ;;  %v1873_v17 = vpack.i.bf16 %v858_v34, %v856_v12  ;;  %v950_v21 = vsel %vm921_vm4, %v947_v33, %v949_v49 }
  0x6c   : > { %1844 = vrot.lane.b32.xlu1 %v1843_v23, %s2111_s17  ;;  %v931_v23 = vrot.slane %v2559_v51, 6 }
  0x6d   : > { %1839 = vrot.lane.b32.xlu0 %v1838_v53, %s2111_s17  ;;  %v371_v53 = vrot.slane %v2407_v47, 1 }
  0x6e   : > { %v932_v30 = vsel %vm921_vm4, %v929_v52, %v931_v23  ;;  %v934_v32 = vsel %vm921_vm4, %v931_v23, %v933_v42 }
  0x6f   : > { %v372_v9 = vsel %vm341_vm1, %v369_v54, %v371_v53  ;;  %v1878_v12 = vpack.i.bf16 %v934_v32, %v932_v30  ;;  %v374_v52 = vsel %vm341_vm1, %v371_v53, %v373_v20  ;;  %v467_v53 = vrot.slane %v2555_v35, 2 }
  0x70   : > { %1854 = vrot.lane.b32.xlu1 %v2455_v4, %s2114_s26  ;;  %v840_v4 = vsel %vm829_vm5, %v837_v36, %v839_v14  ;;  %v355_v36 = vrot.slane %v2415_v60, 1  ;;  %v1893_v23 = vpack.i.bf16 %v374_v52, %v372_v9  ;;  %v615_v30 = vrot.slane %v2555_v35, 3 }
  0x71   : > { %1849 = vrot.lane.b32.xlu0 %v2457_v43, %s2114_s26  ;;  %v842_v43 = vsel %vm829_vm5, %v839_v14, %v841_v19  ;;  %v948_v14 = vsel %vm921_vm4, %v945_v45, %v947_v33  ;;  %v2052_v45 = vld [vmem:[%s3155_s2 + $0x20] ss:$0 sps:$4 sm:$0xff]   ;;  %v617_v32 = vrot.slane %v2557_v22, 3  ;;  %v468_v9 = vsel %vm433_vm0, %v465_v15, %v467_v53 }
  0x72   : > { %v1868_v18 = vpack.i.bf16 %v842_v43, %v840_v4  ;;  %v1883_v33 = vpack.i.bf16 %v950_v21, %v948_v14  ;;  %v356_v34 = vsel %vm341_vm1, %v353_v63, %v355_v36  ;;  %v358_v54 = vsel %vm341_vm1, %v355_v36, %v357_v0  ;;  %v225_v4 = vld [vmem:[%s2192_s8 + $0x98] sm:$0xff]  ;;  %v226_v43 = vld [vmem:[%s2192_s8 + $0xa0] sm:$0xff] }
  0x73   : > { %v469_v14 = vrot.slane %v2557_v22, 2  ;;  %v451_v63 = vrot.slane %v2559_v51, 2  ;;  %v249_v21 = vmul.f32 %v2188_v1, %v225_v4  ;;  %v250_v36 = vmul.f32 %v2188_v1, %v226_v43 }
  0x74   : > { %1864 = vrot.lane.b32.xlu1 %v2593_v6, %s2113_s19  ;;  %v616_v15 = vsel %vm585_vm2, %v613_v8, %v615_v30 }
  0x75   : > { %1859 = vrot.lane.b32.xlu0 %v2595_v44, %s2113_s19  ;;  %v452_v52 = vsel %vm433_vm0, %v449_v37, %v451_v63  ;;  %v1634_v4 = vround.rtne.f32 %v250_v36 }
  0x78   : > { %1874 = vrot.lane.b32.xlu1 %v1873_v17, %s2116_s28  ;;  %v1239_v17 = vsel %vm677_vm3, %v2052_v45, 0  ;;  %v470_v45 = vsel %vm433_vm0, %v467_v53, %v469_v14  ;;  %v695_v53 = vrot.slane %v2320_v41, 4 }
  0x79   : > { %1869 = vrot.lane.b32.xlu0 %v1868_v18, %s2116_s28  ;;  %v1888_v18 = vpack.i.bf16 %v358_v54, %v356_v34  ;;  %1565 = vmatpush3.bf16.msra.mxu0 %v1239_v17  ;;  %v454_v34 = vsel %vm433_vm0, %v451_v63, %v453_v50  ;;  %v1633_v54 = vround.rtne.f32 %v249_v21  ;;  %v2687_v43 = vpack.i.bf16 %v470_v45, %v468_v9 }
  0x7a   : > { %1611 = vmatpush3.bf16.msra.mxu1 %v1239_v17  ;;  %v618_v50 = vsel %vm585_vm2, %v615_v30, %v617_v32  ;;  %v2702_v17 = vclamps-f32 %v1634_v4, 127.0  ;;  %v696_v21 = vsel %vm677_vm3, %v693_v57, %v695_v53  ;;  %v698_v36 = vsel %vm677_vm3, %v695_v53, %v697_v40 }
  0x7b   : > { %v843_v30 = vrot.slane %v2320_v41, 5  ;;  %v845_v9 = vrot.slane %v2329_v46, 5  ;;  %v935_v40 = vrot.slane %v2320_v41, 6 }
  0x7c   : > { %1884 = vrot.lane.b32.xlu1 %v1883_v33, %s2115_s27  ;;  %v599_v33 = vrot.slane %v2559_v51, 3  ;;  %v713_v63 = vrot.slane %v2702_v17, 4  ;;  %v861_v57 = vrot.slane %v2702_v17, 5 }
  0x7d   : > { %1879 = vrot.lane.b32.xlu0 %v1878_v12, %s2115_s27  ;;  %v601_v12 = vrot.slane %v2316_v39, 3  ;;  %v846_v4 = vsel %vm829_vm5, %v843_v30, %v845_v9 }
  0x7e   : > { %v600_v37 = vsel %vm585_vm2, %v597_v7, %v599_v33 }
  0x7f   : > { %v602_v8 = vsel %vm585_vm2, %v599_v33, %v601_v12 }
  0x80   : > { %1894 = vrot.lane.b32.xlu1 %v1893_v23, %s2110_s14  ;;  %v2689_v23 = vpack.i.bf16 %v454_v34, %v452_v52  ;;  %v2729_v34 = vpack.i.bf16 %v698_v36, %v696_v21  ;;  %v359_v21 = vrot.slane %v2559_v51, 1 }
  0x81   : > { %1889 = vrot.lane.b32.xlu0 %v1888_v18, %s2110_s14  ;;  %v1918_v18 = vpack.i.bf16 %v602_v8, %v600_v37  ;;  %v953_v37 = vrot.slane %v2702_v17, 6 }
  0x84   : > { %1904 = vrot.lane.b32.xlu1 %v2535_v27, %s2112_s18  ;;  %v2700_v27 = vclamps-f32 %v1633_v54, 127.0 }
  0x85   : > { %1899 = vrot.lane.b32.xlu0 %v2544_v58, %s2112_s18  ;;  %v1923_v58 = vpack.i.bf16 %v618_v50, %v616_v15  ;;  %v937_v15 = vrot.slane %v2329_v46, 6 }
  0x86   : > { %v711_v7 = vrot.slane %v2700_v27, 4  ;;  %v859_v52 = vrot.slane %v2700_v27, 5 }
  0x88   : > { %1914 = vrot.lane.b32.xlu1 %v2687_v43, %s2109_s13  ;;  %v712_v45 = vsel %vm677_vm3, %v709_v55, %v711_v7  ;;  %v714_v33 = vsel %vm677_vm3, %v711_v7, %v713_v63  ;;  %v844_v55 = vsel %vm829_vm5, %v841_v19, %v843_v30  ;;  %v860_v50 = vsel %vm829_vm5, %v857_v3, %v859_v52 }
  0x89   : > { %1909 = vrot.lane.b32.xlu0 %v2689_v23, %s2109_s13  ;;  %v2736_v54 = vpack.i.bf16 %v714_v33, %v712_v45  ;;  %v936_v19 = vsel %vm921_vm4, %v933_v42, %v935_v40  ;;  %v1948_v8 = vpack.i.bf16 %v846_v4, %v844_v55  ;;  %v377_v7 = vrot.slane %v2557_v22, 1  ;;  %v227_v45 = vld [vmem:[%s2192_s8 + $0xa8] sm:$0xff]  ;;  %v228_v33 = vld [vmem:[%s2192_s8 + $0xb0] sm:$0x3f]  ;;  %s197_s8 = sadd.s32 %s1613_s7, %s3171_s5 }
  0x8a   : > { %v362_v55 = vsel %vm341_vm1, %v359_v21, %v361_v48  ;;  %v251_v4 = vmul.f32 %v2188_v1, %v227_v45  ;;  %v603_v48 = vrot.slane %v2320_v41, 3  ;;  %s1500_s9 = sshll.u32 %s197_s8, 3 }
  0x8b   : > { %s3065_s20 = scalar_lea.vmem %s3157_s4, %s1500_s9 }
  0x8c   : > { %1924 = vrot.lane.b32.xlu1 %v1923_v58, %s2111_s17  ;;  %v938_v58 = vsel %vm921_vm4, %v935_v40, %v937_v15  ;;  %v360_v40 = vsel %vm341_vm1, %v357_v0, %v359_v21  ;;  %v619_v0 = vrot.slane %v2700_v27, 3  ;;  %v604_v21 = vsel %vm585_vm2, %v601_v12, %v603_v48 }
  0x8d   : > { %1919 = vrot.lane.b32.xlu0 %v1918_v18, %s2111_s17  ;;  %v375_v18 = vrot.slane %v2555_v35, 1  ;;  %v1958_v30 = vpack.i.bf16 %v938_v58, %v936_v19  ;;  %v529_v19 = vrot.slane %v2702_v17, 2 }
  0x90   : > { %1934 = vrot.lane.b32.xlu1 %v2593_v6, %s2114_s26  ;;  %v862_v6 = vsel %vm829_vm5, %v859_v52, %v861_v57  ;;  %v378_v52 = vsel %vm341_vm1, %v375_v18, %v377_v7 }
  0x91   : > { %1929 = vrot.lane.b32.xlu0 %v2595_v44, %s2114_s26  ;;  %v951_v44 = vrot.slane %v2700_v27, 6  ;;  %v1953_v3 = vpack.i.bf16 %v862_v6, %v860_v50  ;;  %v252_v50 = vmul.f32 %v2188_v1, %v228_v33 }
  0x93   : > { %v952_v53 = vsel %vm921_vm4, %v949_v49, %v951_v44  ;;  %v954_v42 = vsel %vm921_vm4, %v951_v44, %v953_v37  ;;  %v376_v49 = vsel %vm341_vm1, %v373_v20, %v375_v18  ;;  %v1968_v20 = vpack.i.bf16 %v362_v55, %v360_v40 }
  0x94   : > { %1944 = vrot.lane.b32.xlu1 %v2736_v54, %s2113_s19  ;;  %v1963_v36 = vpack.i.bf16 %v954_v42, %v952_v53  ;;  %v1973_v6 = vpack.i.bf16 %v378_v52, %v376_v49  ;;  %v527_v44 = vrot.slane %v2700_v27, 2  ;;  %v1636_v58 = vround.rtne.f32 %v252_v50 }
  0x95   : > { %1939 = vrot.lane.b32.xlu0 %v2729_v34, %s2113_s19  ;;  %v620_v27 = vsel %vm585_vm2, %v617_v32, %v619_v0 }
  0x96   : > { %v528_v18 = vsel %vm433_vm0, %v469_v14, %v527_v44  ;;  %v530_v53 = vsel %vm433_vm0, %v527_v44, %v529_v19  ;;  %v2813_v14 = vclamps-f32 %v1636_v58, 127.0 }
  0x97   : > { %v1993_v22 = vpack.i.bf16 %v530_v53, %v528_v18 }
  0x98   : > { %1954 = vrot.lane.b32.xlu1 %v1953_v3, %s2116_s28  ;;  %v621_v3 = vrot.slane %v2702_v17, 3 }
  0x99   : > { %1949 = vrot.lane.b32.xlu0 %v1948_v8, %s2116_s28  ;;  %v1635_v8 = vround.rtne.f32 %v251_v4 }
  0x9a   : > { %v622_v7 = vsel %vm585_vm2, %v619_v0, %v621_v3 }
  0x9b   : > { %v2003_v12 = vpack.i.bf16 %v622_v7, %v620_v27  ;;  %v865_v7 = vrot.slane %v2813_v14, 5 }
  0x9c   : > { %1964 = vrot.lane.b32.xlu1 %v1963_v36, %s2115_s27  ;;  %v606_v36 = vsel %vm585_vm2, %v603_v48, %v605_v11 }
  0x9d   : > { %1959 = vrot.lane.b32.xlu0 %v1958_v30, %s2115_s27  ;;  %v2811_v30 = vclamps-f32 %v1635_v8, 127.0  ;;  %v1998_v49 = vpack.i.bf16 %v606_v36, %v604_v21 }
  0x9f   : > { %v771_v55 = vrot.slane %v2811_v30, 4  ;;  %v863_v27 = vrot.slane %v2811_v30, 5 }
  0xa0   : > { %1974 = vrot.lane.b32.xlu1 %v1973_v6, %s2110_s14 }
  0xa1   : > { %1969 = vrot.lane.b32.xlu0 %v1968_v20, %s2110_s14 }
  0xa2   : > { %v1700_v1 = vpop.permute.xlu1 %1699 }
  0xa3   : > { %v1690_v42 = vpop.permute.xlu0 %1689  ;;  %v1702_v4 = vunpack.i.h.bf16 %v1700_v1  ;;  %v1701_v50 = vunpack.i.l.bf16 %v1700_v1 }
  0xa4   : > { %v1692_v45 = vunpack.i.h.bf16 %v1690_v42  ;;  %v1691_v33 = vunpack.i.l.bf16 %v1690_v42  ;;  %1984 = vrot.lane.b32.xlu1 %v2687_v43, %s2112_s18  ;;  %v773_v43 = vrot.slane %v2813_v14, 4 }
  0xa5   : > { %1979 = vrot.lane.b32.xlu0 %v2689_v23, %s2112_s18 }
  0xa6   : > { %v1705_v32 = vpop.permute.xlu1 %1704  ;;  %v1015_v23 = vsel %vm1013_vm7, %v2222_v29, %v1692_v45  ;;  %v1014_v6 = vsel %vm1013_vm7, %v2220_v28, %v1691_v33  ;;  %v847_v28 = vrot.slane %v2347_v61, 5  ;;  %v772_v33 = vsel %vm677_vm3, %v713_v63, %v771_v55 }
  0xa7   : > { %v1695_v11 = vpop.permute.xlu0 %1694  ;;  %v1707_v20 = vunpack.i.h.bf16 %v1705_v32  ;;  %v1706_v44 = vunpack.i.l.bf16 %v1705_v32 }
  0xa8   : > { %v1697_v52 = vunpack.i.h.bf16 %v1695_v11  ;;  %v1696_v40 = vunpack.i.l.bf16 %v1695_v11  ;;  %1994 = vrot.lane.b32.xlu1 %v1993_v22, %s2109_s13  ;;  %v774_v22 = vsel %vm677_vm3, %v771_v55, %v773_v43  ;;  %v957_v43 = vrot.slane %v2813_v14, 6 }
  0xa9   : > { %1989 = vrot.lane.b32.xlu0 %v2363_v10, %s2109_s13 }
  0xaa   : > { %v1033_v19 = vsel %vm1032_vm8, %v1014_v6, %v1696_v40  ;;  %v1034_v0 = vsel %vm1032_vm8, %v1015_v23, %v1697_v52  ;;  %v1715_v3 = vpop.permute.xlu1 %1714  ;;  %v939_v52 = vrot.slane %v2347_v61, 6  ;;  %v955_v23 = vrot.slane %v2811_v30, 6 }
  0xab   : > { %v1052_v48 = vsel %vm1051_vm9, %v1033_v19, %v1701_v50  ;;  %v1053_v8 = vsel %vm1051_vm9, %v1034_v0, %v1702_v4  ;;  %v1710_v29 = vpop.permute.xlu0 %1709  ;;  %v1717_v53 = vunpack.i.h.bf16 %v1715_v3  ;;  %v1716_v42 = vunpack.i.l.bf16 %v1715_v3 }
  0xac   : > { %v1712_v58 = vunpack.i.h.bf16 %v1710_v29  ;;  %v1711_v1 = vunpack.i.l.bf16 %v1710_v29  ;;  %v1071_v18 = vsel %vm1070_vm10, %v1052_v48, %v1706_v44  ;;  %v1072_v10 = vsel %vm1070_vm10, %v1053_v8, %v1707_v20  ;;  %2004 = vrot.lane.b32.xlu1 %v2003_v12, %s2111_s17 }
  0xad   : > { %1999 = vrot.lane.b32.xlu0 %v1998_v49, %s2111_s17  ;;  %v848_v49 = vsel %vm829_vm5, %v845_v9, %v847_v28  ;;  %v850_v50 = vsel %vm829_vm5, %v847_v28, %v849_v13  ;;  %v2023_v9 = vpack.i.bf16 %v774_v22, %v772_v33  ;;  %v864_v13 = vsel %vm829_vm5, %v861_v57, %v863_v27 }
  0xae   : > { %v1090_v21 = vsel %vm1089_vm11, %v1071_v18, %v1711_v1  ;;  %v1091_v36 = vsel %vm1089_vm11, %v1072_v10, %v1712_v58  ;;  %v1725_v45 = vpop.permute.xlu1 %1724  ;;  %v866_v30 = vsel %vm829_vm5, %v863_v27, %v865_v7  ;;  %v2028_v3 = vpack.i.bf16 %v850_v50, %v848_v49 }
  0xaf   : > { %v1727_v32 = vunpack.i.h.bf16 %v1725_v45  ;;  %v1726_v11 = vunpack.i.l.bf16 %v1725_v45  ;;  %v1720_v12 = vpop.permute.xlu0 %1719  ;;  %v1109_v63 = vsel %vm1108_vm12, %v1090_v21, %v1716_v42  ;;  %v1110_v55 = vsel %vm1108_vm12, %v1091_v36, %v1717_v53 }
  0xb0   : > { %v1722_v40 = vunpack.i.h.bf16 %v1720_v12  ;;  %v1721_v4 = vunpack.i.l.bf16 %v1720_v12  ;;  %2014 = vrot.lane.b32.xlu1 %v2736_v54, %s2114_s26  ;;  %v2033_v14 = vpack.i.bf16 %v866_v30, %v864_v13  ;;  %v956_v57 = vsel %vm921_vm4, %v953_v37, %v955_v23 }
  0xb1   : > { %2009 = vrot.lane.b32.xlu0 %v2729_v34, %s2114_s26  ;;  %v958_v48 = vsel %vm921_vm4, %v955_v23, %v957_v43  ;;  %v940_v8 = vsel %vm921_vm4, %v937_v15, %v939_v52  ;;  %v942_v29 = vsel %vm921_vm4, %v939_v52, %v941_v38 }
  0xb2   : > { %v1128_v6 = vsel %vm1127_vm13, %v1109_v63, %v1721_v4  ;;  %v1129_v20 = vsel %vm1127_vm13, %v1110_v55, %v1722_v40  ;;  %v1735_v44 = vpop.permute.xlu1 %1734  ;;  %v2043_v17 = vpack.i.bf16 %v958_v48, %v956_v57  ;;  %v2038_v37 = vpack.i.bf16 %v942_v29, %v940_v8 }
  0xb3   : > { %v1730_v19 = vpop.permute.xlu0 %1729  ;;  %v1147_v54 = vsel %vm1146_vm14, %v1128_v6, %v1726_v11  ;;  %v1148_v0 = vsel %vm1146_vm14, %v1129_v20, %v1727_v32  ;;  %v1737_v18 = vunpack.i.h.bf16 %v1735_v44  ;;  %v1736_v10 = vunpack.i.l.bf16 %v1735_v44 }
  0xb4   : > { %2024 = vrot.lane.b32.xlu1 %v2023_v9, %s2113_s19  ;;  %v1165_v34 = vpack.c.bf16 %v1148_v0, %v1147_v54  ;;  %v1732_v53 = vunpack.i.h.bf16 %v1730_v19  ;;  %v1731_v42 = vunpack.i.l.bf16 %v1730_v19 }
  0xb5   : > { %2019 = vrot.lane.b32.xlu0 %v2431_v16, %s2113_s19  ;;  %v1025_v49 = vsel %vm1013_vm7, %v2320_v41, %v1737_v18  ;;  %v1024_v52 = vsel %vm1013_vm7, %v2316_v39, %v1736_v10 }
  0xb6   : > { %1567 = vmatmul.mubr.msk.bf16.vlgmr.msra.gmra.mrb[0].mxu0 %vm1210_vm15, %v1165_v34  ;;  %v1745_v16 = vpop.permute.xlu1 %1744  ;;  %v1017_v40 = vsel %vm1013_vm7, %v2213_v25, %v1732_v53  ;;  %v1016_v4 = vsel %vm1013_vm7, %v2211_v24, %v1731_v42 }
  0xb7   : > { %v1740_v28 = vpop.permute.xlu0 %1739  ;;  %1570 = vmatprep.mubr.msk.bf16.mxu0 %vm2117_vm6, %v2108_v2  ;;  %v1747_v27 = vunpack.i.h.bf16 %v1745_v16  ;;  %v1746_v7 = vunpack.i.l.bf16 %v1745_v16 }
  0xb8   : > { %2034 = vrot.lane.b32.xlu1 %v2033_v14, %s2116_s28  ;;  %v1742_v21 = vunpack.i.h.bf16 %v1740_v28  ;;  %v1741_v36 = vunpack.i.l.bf16 %v1740_v28 }
  0xb9   : > { %2029 = vrot.lane.b32.xlu0 %v2028_v3, %s2116_s28  ;;  %v1043_v50 = vsel %vm1032_vm8, %v1024_v52, %v1746_v7  ;;  %v1044_v23 = vsel %vm1032_vm8, %v1025_v49, %v1747_v27 }
  0xba   : > { %v1755_v58 = vpop.permute.xlu1 %1754  ;;  %v1035_v63 = vsel %vm1032_vm8, %v1016_v4, %v1741_v36  ;;  %v1036_v55 = vsel %vm1032_vm8, %v1017_v40, %v1742_v21 }
  0xbb   : > { %v1750_v1 = vpop.permute.xlu0 %1749  ;;  %v1757_v22 = vunpack.i.h.bf16 %v1755_v58  ;;  %v1756_v32 = vunpack.i.l.bf16 %v1755_v58 }
  0xbc   : > { %2044 = vrot.lane.b32.xlu1 %v2043_v17, %s2115_s27  ;;  %v1752_v11 = vunpack.i.h.bf16 %v1750_v1  ;;  %v1751_v12 = vunpack.i.l.bf16 %v1750_v1 }
  0xbd   : > { %2039 = vrot.lane.b32.xlu0 %v2038_v37, %s2115_s27  ;;  %v1062_v13 = vsel %vm1051_vm9, %v1043_v50, %v1756_v32  ;;  %v1063_v25 = vsel %vm1051_vm9, %v1044_v23, %v1757_v22 }
  0xbe   : > { %v1765_v38 = vpop.permute.xlu1 %1764  ;;  %v1054_v24 = vsel %vm1051_vm9, %v1035_v63, %v1751_v12  ;;  %v1055_v30 = vsel %vm1051_vm9, %v1036_v55, %v1752_v11 }
  0xbf   : > { %v1760_v15 = vpop.permute.xlu0 %1759  ;;  %v1767_v41 = vunpack.i.h.bf16 %v1765_v38  ;;  %v1766_v6 = vunpack.i.l.bf16 %v1765_v38 }
  0xc0   : > { %v1762_v20 = vunpack.i.h.bf16 %v1760_v15  ;;  %v1761_v39 = vunpack.i.l.bf16 %v1760_v15 }
  0xc1   : > { %v1081_v29 = vsel %vm1070_vm10, %v1062_v13, %v1766_v6  ;;  %v1082_v16 = vsel %vm1070_vm10, %v1063_v25, %v1767_v41 }
  0xc2   : > { %v1775_v45 = vpop.permute.xlu1 %1774  ;;  %v1073_v28 = vsel %vm1070_vm10, %v1054_v24, %v1761_v39  ;;  %v1074_v17 = vsel %vm1070_vm10, %v1055_v30, %v1762_v20 }
  0xc3   : > { %v1770_v33 = vpop.permute.xlu0 %1769  ;;  %v1777_v44 = vunpack.i.h.bf16 %v1775_v45  ;;  %v1776_v19 = vunpack.i.l.bf16 %v1775_v45 }
  0xc4   : > { %v1772_v54 = vunpack.i.h.bf16 %v1770_v33  ;;  %v1771_v0 = vunpack.i.l.bf16 %v1770_v33 }
  0xc5   : > { %v1100_v15 = vsel %vm1089_vm11, %v1081_v29, %v1776_v19  ;;  %v1101_v18 = vsel %vm1089_vm11, %v1082_v16, %v1777_v44 }
  0xc6   : > { %v1785_v9 = vpop.permute.xlu1 %1784  ;;  %v1092_v10 = vsel %vm1089_vm11, %v1073_v28, %v1771_v0  ;;  %v1093_v53 = vsel %vm1089_vm11, %v1074_v17, %v1772_v54 }
  0xc7   : > { %v1780_v43 = vpop.permute.xlu0 %1779  ;;  %v1787_v34 = vunpack.i.h.bf16 %v1785_v9  ;;  %v1786_v14 = vunpack.i.l.bf16 %v1785_v9 }
  0xc8   : > { %v1782_v3 = vunpack.i.h.bf16 %v1780_v43  ;;  %v1781_v57 = vunpack.i.l.bf16 %v1780_v43 }
  0xc9   : > { %v1119_v42 = vsel %vm1108_vm12, %v1100_v15, %v1786_v14  ;;  %v1120_v27 = vsel %vm1108_vm12, %v1101_v18, %v1787_v34 }
  0xca   : > { %v1795_v48 = vpop.permute.xlu1 %1794  ;;  %v1111_v7 = vsel %vm1108_vm12, %v1092_v10, %v1781_v57  ;;  %v1112_v21 = vsel %vm1108_vm12, %v1093_v53, %v1782_v3 }
  0xcb   : > { %v1790_v8 = vpop.permute.xlu0 %1789  ;;  %v1797_v37 = vunpack.i.h.bf16 %v1795_v48  ;;  %v1796_v58 = vunpack.i.l.bf16 %v1795_v48 }
  0xcc   : > { %v1792_v1 = vunpack.i.h.bf16 %v1790_v8  ;;  %v1791_v38 = vunpack.i.l.bf16 %v1790_v8 }
  0xcd   : > { %v1138_v12 = vsel %vm1127_vm13, %v1119_v42, %v1796_v58  ;;  %v1139_v49 = vsel %vm1127_vm13, %v1120_v27, %v1797_v37 }
  0xce   : > { %v1805_v36 = vpop.permute.xlu1 %1804  ;;  %v1130_v52 = vsel %vm1127_vm13, %v1111_v7, %v1791_v38  ;;  %v1131_v40 = vsel %vm1127_vm13, %v1112_v21, %v1792_v1 }
  0xcf   : > { %v1800_v45 = vpop.permute.xlu0 %1799  ;;  %v1807_v33 = vunpack.i.h.bf16 %v1805_v36  ;;  %v1806_v22 = vunpack.i.l.bf16 %v1805_v36 }
  0xd0   : > { %v1802_v32 = vunpack.i.h.bf16 %v1800_v45  ;;  %v1801_v11 = vunpack.i.l.bf16 %v1800_v45 }
  0xd1   : > { %v1157_v4 = vsel %vm1146_vm14, %v1138_v12, %v1806_v22  ;;  %v1158_v50 = vsel %vm1146_vm14, %v1139_v49, %v1807_v33 }
  0xd2   : > { %v1149_v23 = vsel %vm1146_vm14, %v1130_v52, %v1801_v11  ;;  %v1150_v63 = vsel %vm1146_vm14, %v1131_v40, %v1802_v32  ;;  %v1170_v55 = vpack.c.bf16 %v1158_v50, %v1157_v4  ;;  %v1815_v43 = vpop.permute.xlu1 %1814 }
  0xd3   : > { %v1166_v9 = vpack.c.bf16 %v1150_v63, %v1149_v23  ;;  %v1810_v41 = vpop.permute.xlu0 %1809  ;;  %v1817_v30 = vunpack.i.h.bf16 %v1815_v43  ;;  %v1816_v44 = vunpack.i.l.bf16 %v1815_v43 }
  0xd4   : > { %1587 = vmatmul.mubr.msk.bf16.vlgmr.msra.gmra.mrb[0].mxu1 %vm1210_vm15, %v1170_v55  ;;  %v1812_v19 = vunpack.i.h.bf16 %v1810_v41  ;;  %v1811_v54 = vunpack.i.l.bf16 %v1810_v41 }
  0xd5   : > { %1571 = vmatmul.mubr.msk.bf16.gmra.mrb[4].mxu0 %vm1210_vm15, %v1166_v9  ;;  %1590 = vmatprep.mubr.msk.bf16.mxu1 %vm2117_vm6, %v2108_v2  ;;  %v1027_v17 = vsel %vm1013_vm7, %v2347_v61, %v1817_v30  ;;  %v1026_v37 = vsel %vm1013_vm7, %v2329_v46, %v1816_v44 }
  0xd6   : > { %1574 = vmatprep.mubr.msk.bf16.mxu0 %vm2117_vm6, %v2108_v2  ;;  %v1825_v6 = vpop.permute.xlu1 %1824  ;;  %v1019_v58 = vsel %vm1013_vm7, %v2224_v31, %v1812_v19  ;;  %v1018_v1 = vsel %vm1013_vm7, %v2215_v26, %v1811_v54 }
  0xd7   : > { %v1820_v20 = vpop.permute.xlu0 %1819  ;;  %v1827_v0 = vunpack.i.h.bf16 %v1825_v6  ;;  %v1826_v34 = vunpack.i.l.bf16 %v1825_v6 }
  0xd8   : > { %v1822_v14 = vunpack.i.h.bf16 %v1820_v20  ;;  %v1821_v3 = vunpack.i.l.bf16 %v1820_v20 }
  0xd9   : > { %v1045_v38 = vsel %vm1032_vm8, %v1026_v37, %v1826_v34  ;;  %v1046_v15 = vsel %vm1032_vm8, %v1027_v17, %v1827_v0 }
  0xda   : > { %v1835_v39 = vpop.permute.xlu1 %1834  ;;  %v1037_v18 = vsel %vm1032_vm8, %v1018_v1, %v1821_v3  ;;  %v1038_v10 = vsel %vm1032_vm8, %v1019_v58, %v1822_v14 }
  0xdb   : > { %v1830_v13 = vpop.permute.xlu0 %1829  ;;  %v1837_v8 = vunpack.i.h.bf16 %v1835_v39  ;;  %v1836_v29 = vunpack.i.l.bf16 %v1835_v39 }
  0xdc   : > { %v1832_v16 = vunpack.i.h.bf16 %v1830_v13  ;;  %v1831_v28 = vunpack.i.l.bf16 %v1830_v13 }
  0xdd   : > { %v1064_v21 = vsel %vm1051_vm9, %v1045_v38, %v1836_v29  ;;  %v1065_v31 = vsel %vm1051_vm9, %v1046_v15, %v1837_v8 }
  0xde   : > { %v1845_v25 = vpop.permute.xlu1 %1844  ;;  %v1056_v26 = vsel %vm1051_vm9, %v1037_v18, %v1831_v28  ;;  %v1057_v36 = vsel %vm1051_vm9, %v1038_v10, %v1832_v16 }
  0xdf   : > { %v1840_v24 = vpop.permute.xlu0 %1839  ;;  %v1847_v61 = vunpack.i.h.bf16 %v1845_v25  ;;  %v1846_v27 = vunpack.i.l.bf16 %v1845_v25 }
  0xe0   : > { %v1842_v7 = vunpack.i.h.bf16 %v1840_v24  ;;  %v1841_v46 = vunpack.i.l.bf16 %v1840_v24 }
  0xe1   : > { %v1083_v50 = vsel %vm1070_vm10, %v1064_v21, %v1846_v27  ;;  %v1084_v23 = vsel %vm1070_vm10, %v1065_v31, %v1847_v61 }
  0xe2   : > { %v1855_v57 = vpop.permute.xlu1 %1854  ;;  %v1075_v63 = vsel %vm1070_vm10, %v1056_v26, %v1841_v46  ;;  %v1076_v55 = vsel %vm1070_vm10, %v1057_v36, %v1842_v7 }
  0xe3   : > { %v1850_v48 = vpop.permute.xlu0 %1849  ;;  %v1857_v45 = vunpack.i.h.bf16 %v1855_v57  ;;  %v1856_v33 = vunpack.i.l.bf16 %v1855_v57 }
  0xe4   : > { %v1852_v22 = vunpack.i.h.bf16 %v1850_v48  ;;  %v1851_v32 = vunpack.i.l.bf16 %v1850_v48 }
  0xe5   : > { %v1102_v20 = vsel %vm1089_vm11, %v1083_v50, %v1856_v33  ;;  %v1103_v39 = vsel %vm1089_vm11, %v1084_v23, %v1857_v45 }
  0xe6   : > { %v1865_v53 = vpop.permute.xlu1 %1864  ;;  %v1094_v13 = vsel %vm1089_vm11, %v1075_v63, %v1851_v32  ;;  %v1095_v25 = vsel %vm1089_vm11, %v1076_v55, %v1852_v22 }
  0xe7   : > { %v1860_v42 = vpop.permute.xlu0 %1859  ;;  %v1867_v11 = vunpack.i.h.bf16 %v1865_v53  ;;  %v1866_v12 = vunpack.i.l.bf16 %v1865_v53 }
  0xe8   : > { %v1862_v49 = vunpack.i.h.bf16 %v1860_v42  ;;  %v1861_v52 = vunpack.i.l.bf16 %v1860_v42 }
  0xe9   : > { %v1121_v24 = vsel %vm1108_vm12, %v1102_v20, %v1866_v12  ;;  %v1122_v30 = vsel %vm1108_vm12, %v1103_v39, %v1867_v11 }
  0xea   : > { %v1875_v40 = vpop.permute.xlu1 %1874  ;;  %v1113_v44 = vsel %vm1108_vm12, %v1094_v13, %v1861_v52  ;;  %v1114_v19 = vsel %vm1108_vm12, %v1095_v25, %v1862_v49 }
  0xeb   : > { %v1870_v4 = vpop.permute.xlu0 %1869  ;;  %v1877_v9 = vunpack.i.h.bf16 %v1875_v40  ;;  %v1876_v43 = vunpack.i.l.bf16 %v1875_v40 }
  0xec   : > { %v1872_v41 = vunpack.i.h.bf16 %v1870_v4  ;;  %v1871_v6 = vunpack.i.l.bf16 %v1870_v4 }
  0xed   : > { %v1140_v48 = vsel %vm1127_vm13, %v1121_v24, %v1876_v43  ;;  %v1141_v8 = vsel %vm1127_vm13, %v1122_v30, %v1877_v9 }
  0xee   : > { %v1885_v54 = vpop.permute.xlu1 %1884  ;;  %v1132_v29 = vsel %vm1127_vm13, %v1113_v44, %v1871_v6  ;;  %v1133_v16 = vsel %vm1127_vm13, %v1114_v19, %v1872_v41 }
  0xef   : > { %v1880_v0 = vpop.permute.xlu0 %1879  ;;  %v1887_v34 = vunpack.i.h.bf16 %v1885_v54  ;;  %v1886_v14 = vunpack.i.l.bf16 %v1885_v54 }
  0xf0   : > { %v1882_v3 = vunpack.i.h.bf16 %v1880_v0  ;;  %v1881_v57 = vunpack.i.l.bf16 %v1880_v0 }
  0xf1   : > { %v1159_v28 = vsel %vm1146_vm14, %v1140_v48, %v1886_v14  ;;  %v1160_v17 = vsel %vm1146_vm14, %v1141_v8, %v1887_v34 }
  0xf2   : > { %v1151_v37 = vsel %vm1146_vm14, %v1132_v29, %v1881_v57  ;;  %v1152_v58 = vsel %vm1146_vm14, %v1133_v16, %v1882_v3  ;;  %v1171_v1 = vpack.c.bf16 %v1160_v17, %v1159_v28  ;;  %v1895_v15 = vpop.permute.xlu1 %1894 }
  0xf3   : > { %v1167_v38 = vpack.c.bf16 %v1152_v58, %v1151_v37  ;;  %v1890_v18 = vpop.permute.xlu0 %1889  ;;  %v1897_v46 = vunpack.i.h.bf16 %v1895_v15  ;;  %v1896_v21 = vunpack.i.l.bf16 %v1895_v15 }
  0xf4   : > { %1591 = vmatmul.mubr.msk.bf16.gmra.mrb[4].mxu1 %vm1210_vm15, %v1171_v1  ;;  %v1892_v31 = vunpack.i.h.bf16 %v1890_v18  ;;  %v1891_v26 = vunpack.i.l.bf16 %v1890_v18 }
  0xf5   : > { %1575 = vmatmul.mubr.msk.bf16.gmra.mrb[8].mxu0 %vm1210_vm15, %v1167_v38  ;;  %1594 = vmatprep.mubr.msk.bf16.mxu1 %vm2117_vm6, %v2108_v2  ;;  %v1029_v4 = vsel %vm1013_vm7, %v2407_v47, %v1897_v46  ;;  %v1028_v50 = vsel %vm1013_vm7, %v2349_v62, %v1896_v21 }
  0xf6   : > { %1578 = vmatprep.mubr.msk.bf16.mxu0 %vm2117_vm6, %v2108_v2  ;;  %v1905_v10 = vpop.permute.xlu1 %1904  ;;  %v1021_v23 = vsel %vm1013_vm7, %v2415_v60, %v1892_v31  ;;  %v1020_v63 = vsel %vm1013_vm7, %v2265_v56, %v1891_v26 }
  0xf7   : > { %v1900_v53 = vpop.permute.xlu0 %1899  ;;  %v1907_v36 = vunpack.i.h.bf16 %v1905_v10  ;;  %v1906_v45 = vunpack.i.l.bf16 %v1905_v10 }
  0xf8   : > { %v1902_v33 = vunpack.i.h.bf16 %v1900_v53  ;;  %v1901_v22 = vunpack.i.l.bf16 %v1900_v53 }
  0xf9   : > { %v1047_v55 = vsel %vm1032_vm8, %v1028_v50, %v1906_v45  ;;  %v1048_v9 = vsel %vm1032_vm8, %v1029_v4, %v1907_v36 }
  0xfa   : > { %v1915_v42 = vpop.permute.xlu1 %1914  ;;  %v1039_v43 = vsel %vm1032_vm8, %v1020_v63, %v1901_v22  ;;  %v1040_v41 = vsel %vm1032_vm8, %v1021_v23, %v1902_v33 }
  0xfb   : > { %v1910_v61 = vpop.permute.xlu0 %1909  ;;  %v1917_v12 = vunpack.i.h.bf16 %v1915_v42  ;;  %v1916_v49 = vunpack.i.l.bf16 %v1915_v42 }
  0xfc   : > { %v1912_v52 = vunpack.i.h.bf16 %v1910_v61  ;;  %v1911_v40 = vunpack.i.l.bf16 %v1910_v61 }
  0xfd   : > { %v1066_v25 = vsel %vm1051_vm9, %v1047_v55, %v1916_v49  ;;  %v1067_v60 = vsel %vm1051_vm9, %v1048_v9, %v1917_v12 }
  0xfe   : > { %v1925_v27 = vpop.permute.xlu1 %1924  ;;  %v1058_v56 = vsel %vm1051_vm9, %v1039_v43, %v1911_v40  ;;  %v1059_v24 = vsel %vm1051_vm9, %v1040_v41, %v1912_v52 }
  0xff   : > { %v1920_v7 = vpop.permute.xlu0 %1919  ;;  %v1927_v47 = vunpack.i.h.bf16 %v1925_v27  ;;  %v1926_v39 = vunpack.i.l.bf16 %v1925_v27 }
 0x100   : > { %v1922_v13 = vunpack.i.h.bf16 %v1920_v7  ;;  %v1921_v62 = vunpack.i.l.bf16 %v1920_v7 }
 0x101   : > { %v1085_v8 = vsel %vm1070_vm10, %v1066_v25, %v1926_v39  ;;  %v1086_v29 = vsel %vm1070_vm10, %v1067_v60, %v1927_v47 }
 0x102   : > { %v1935_v32 = vpop.permute.xlu1 %1934  ;;  %v1077_v16 = vsel %vm1070_vm10, %v1058_v56, %v1921_v62  ;;  %v1078_v28 = vsel %vm1070_vm10, %v1059_v24, %v1922_v13 }
 0x103   : > { %v1930_v11 = vpop.permute.xlu0 %1929  ;;  %v1937_v30 = vunpack.i.h.bf16 %v1935_v32  ;;  %v1936_v44 = vunpack.i.l.bf16 %v1935_v32 }
 0x104   : > { %v1932_v19 = vunpack.i.h.bf16 %v1930_v11  ;;  %v1931_v54 = vunpack.i.l.bf16 %v1930_v11 }
 0x105   : > { %v1104_v38 = vsel %vm1089_vm11, %v1085_v8, %v1936_v44  ;;  %v1105_v15 = vsel %vm1089_vm11, %v1086_v29, %v1937_v30 }
 0x106   : > { %v1945_v6 = vpop.permute.xlu1 %1944  ;;  %v1096_v18 = vsel %vm1089_vm11, %v1077_v16, %v1931_v54  ;;  %v1097_v10 = vsel %vm1089_vm11, %v1078_v28, %v1932_v19 }
 0x107   : > { %v1940_v20 = vpop.permute.xlu0 %1939  ;;  %v1947_v0 = vunpack.i.h.bf16 %v1945_v6  ;;  %v1946_v34 = vunpack.i.l.bf16 %v1945_v6 }
 0x108   : > { %v1942_v14 = vunpack.i.h.bf16 %v1940_v20  ;;  %v1941_v3 = vunpack.i.l.bf16 %v1940_v20 }
 0x109   : > { %v1123_v53 = vsel %vm1108_vm12, %v1104_v38, %v1946_v34  ;;  %v1124_v42 = vsel %vm1108_vm12, %v1105_v15, %v1947_v0 }
 0x10a   : > { %v1955_v57 = vpop.permute.xlu1 %1954  ;;  %v1115_v61 = vsel %vm1108_vm12, %v1096_v18, %v1941_v3  ;;  %v1116_v27 = vsel %vm1108_vm12, %v1097_v10, %v1942_v14 }
 0x10b   : > { %v1950_v48 = vpop.permute.xlu0 %1949  ;;  %v1957_v17 = vunpack.i.h.bf16 %v1955_v57  ;;  %v1956_v37 = vunpack.i.l.bf16 %v1955_v57 }
 0x10c   : > { %v1952_v58 = vunpack.i.h.bf16 %v1950_v48  ;;  %v1951_v1 = vunpack.i.l.bf16 %v1950_v48 }
 0x10d   : > { %v1142_v45 = vsel %vm1127_vm13, %v1123_v53, %v1956_v37  ;;  %v1143_v33 = vsel %vm1127_vm13, %v1124_v42, %v1957_v17 }
 0x10e   : > { %v1965_v7 = vpop.permute.xlu1 %1964  ;;  %v1134_v22 = vsel %vm1127_vm13, %v1115_v61, %v1951_v1  ;;  %v1135_v32 = vsel %vm1127_vm13, %v1116_v27, %v1952_v58 }
 0x10f   : > { %v1960_v46 = vpop.permute.xlu0 %1959  ;;  %v1967_v21 = vunpack.i.h.bf16 %v1965_v7  ;;  %v1966_v31 = vunpack.i.l.bf16 %v1965_v7 }
 0x110   : > { %v1962_v26 = vunpack.i.h.bf16 %v1960_v46  ;;  %v1961_v36 = vunpack.i.l.bf16 %v1960_v46 }
 0x111   : > { %v1161_v11 = vsel %vm1146_vm14, %v1142_v45, %v1966_v31  ;;  %v1162_v12 = vsel %vm1146_vm14, %v1143_v33, %v1967_v21 }
 0x112   : > { %v1153_v49 = vsel %vm1146_vm14, %v1134_v22, %v1961_v36  ;;  %v1154_v52 = vsel %vm1146_vm14, %v1135_v32, %v1962_v26  ;;  %v1172_v40 = vpack.c.bf16 %v1162_v12, %v1161_v11  ;;  %v1975_v50 = vpop.permute.xlu1 %1974 }
 0x113   : > { %v1168_v4 = vpack.c.bf16 %v1154_v52, %v1153_v49  ;;  %v1970_v23 = vpop.permute.xlu0 %1969  ;;  %v1977_v20 = vunpack.i.h.bf16 %v1975_v50  ;;  %v1976_v47 = vunpack.i.l.bf16 %v1975_v50 }
 0x114   : > { %1595 = vmatmul.mubr.msk.bf16.gmra.mrb[8].mxu1 %vm1210_vm15, %v1172_v40  ;;  %v1972_v39 = vunpack.i.h.bf16 %v1970_v23  ;;  %v1971_v13 = vunpack.i.l.bf16 %v1970_v23 }
 0x115   : > { %1579 = vmatmul.mubr.msk.bf16.gmra.mrb[12].mxu0 %vm1210_vm15, %v1168_v4  ;;  %1598 = vmatprep.mubr.msk.bf16.mxu1 %vm2117_vm6, %v2108_v2  ;;  %v1030_v34 = vsel %vm1013_vm7, %v2413_v59, %v1976_v47 }
 0x116   : > { %1582 = vmatprep.mubr.msk.bf16.mxu0 %vm2117_vm6, %v2108_v2  ;;  %v1985_v63 = vpop.permute.xlu1 %1984  ;;  %v1031_v2 = vsel %vm1013_vm7, %v2555_v35, %v1977_v20  ;;  %v1023_v14 = vsel %vm1013_vm7, %v2559_v51, %v1972_v39  ;;  %v1022_v3 = vsel %vm1013_vm7, %v2422_v5, %v1971_v13 }
 0x117   : > { %v1980_v55 = vpop.permute.xlu0 %1979  ;;  %v1987_v62 = vunpack.i.h.bf16 %v1985_v63  ;;  %v1986_v25 = vunpack.i.l.bf16 %v1985_v63 }
 0x118   : > { %v1982_v60 = vunpack.i.h.bf16 %v1980_v55  ;;  %v1981_v56 = vunpack.i.l.bf16 %v1980_v55 }
 0x119   : > { %v1049_v57 = vsel %vm1032_vm8, %v1030_v34, %v1986_v25  ;;  %v1050_v48 = vsel %vm1032_vm8, %v1031_v2, %v1987_v62 }
 0x11a   : > { %v1995_v9 = vpop.permute.xlu1 %1994  ;;  %v1041_v8 = vsel %vm1032_vm8, %v1022_v3, %v1981_v56  ;;  %v1042_v29 = vsel %vm1032_vm8, %v1023_v14, %v1982_v60 }
 0x11b   : > { %v1990_v43 = vpop.permute.xlu0 %1989  ;;  %v1997_v44 = vunpack.i.h.bf16 %v1995_v9  ;;  %v1996_v19 = vunpack.i.l.bf16 %v1995_v9 }
 0x11c   : > { %v1992_v54 = vunpack.i.h.bf16 %v1990_v43  ;;  %v1991_v0 = vunpack.i.l.bf16 %v1990_v43 }
 0x11d   : > { %v1068_v58 = vsel %vm1051_vm9, %v1049_v57, %v1996_v19  ;;  %v1069_v51 = vsel %vm1051_vm9, %v1050_v48, %v1997_v44  ;;  %v3054_v44 = vstv %s1501_s6 }
 0x11e   : > { %v2005_v41 = vpop.permute.xlu1 %2004  ;;  %v1060_v5 = vsel %vm1051_vm9, %v1041_v8, %v1991_v0  ;;  %v1061_v1 = vsel %vm1051_vm9, %v1042_v29, %v1992_v54  ;;  %v3059_v54 = vld [vmem:[%s3156_s3] ss:$0 sm:$0xff] }
 0x11f   : > { %v2000_v6 = vpop.permute.xlu0 %1999  ;;  %v2007_v35 = vunpack.i.h.bf16 %v2005_v41  ;;  %v2006_v17 = vunpack.i.l.bf16 %v2005_v41 }
 0x120   : > { %v2002_v37 = vunpack.i.h.bf16 %v2000_v6  ;;  %v2001_v59 = vunpack.i.l.bf16 %v2000_v6 }
 0x121   : > { %v1087_v21 = vsel %vm1070_vm10, %v1068_v58, %v2006_v17  ;;  %v1088_v31 = vsel %vm1070_vm10, %v1069_v51, %v2007_v35 }
 0x122   : > { %v2015_v24 = vpop.permute.xlu1 %2014  ;;  %v1079_v26 = vsel %vm1070_vm10, %v1060_v5, %v2001_v59  ;;  %v1080_v36 = vsel %vm1070_vm10, %v1061_v1, %v2002_v37 }
 0x123   : > { %v2010_v30 = vpop.permute.xlu0 %2009  ;;  %v2017_v38 = vunpack.i.h.bf16 %v2015_v24  ;;  %v2016_v15 = vunpack.i.l.bf16 %v2015_v24 }
 0x124   : > { %v2012_v18 = vunpack.i.h.bf16 %v2010_v30  ;;  %v2011_v10 = vunpack.i.l.bf16 %v2010_v30 }
 0x125   : > { %v1106_v11 = vsel %vm1089_vm11, %v1087_v21, %v2016_v15  ;;  %v1107_v12 = vsel %vm1089_vm11, %v1088_v31, %v2017_v38 }
 0x126   : > { %v2025_v16 = vpop.permute.xlu1 %2024  ;;  %v1098_v49 = vsel %vm1089_vm11, %v1079_v26, %v2011_v10  ;;  %v1099_v52 = vsel %vm1089_vm11, %v1080_v36, %v2012_v18 }
 0x127   : > { %v2020_v28 = vpop.permute.xlu0 %2019  ;;  %v2027_v53 = vunpack.i.h.bf16 %v2025_v16  ;;  %v2026_v42 = vunpack.i.l.bf16 %v2025_v16 }
 0x128   : > { %v2022_v61 = vunpack.i.h.bf16 %v2020_v28  ;;  %v2021_v27 = vunpack.i.l.bf16 %v2020_v28 }
 0x129   : > { %v1125_v40 = vsel %vm1108_vm12, %v1106_v11, %v2026_v42  ;;  %v1126_v4 = vsel %vm1108_vm12, %v1107_v12, %v2027_v53 }
 0x12a   : > { %v2035_v7 = vpop.permute.xlu1 %2034  ;;  %v1117_v50 = vsel %vm1108_vm12, %v1098_v49, %v2021_v27  ;;  %v1118_v23 = vsel %vm1108_vm12, %v1099_v52, %v2022_v61 }
 0x12b   : > { %v2030_v46 = vpop.permute.xlu0 %2029  ;;  %v2037_v45 = vunpack.i.h.bf16 %v2035_v7  ;;  %v2036_v33 = vunpack.i.l.bf16 %v2035_v7 }
 0x12c   : > { %v2032_v22 = vunpack.i.h.bf16 %v2030_v46  ;;  %v2031_v32 = vunpack.i.l.bf16 %v2030_v46 }
 0x12d   : > { %v1144_v20 = vsel %vm1127_vm13, %v1125_v40, %v2036_v33  ;;  %v1145_v47 = vsel %vm1127_vm13, %v1126_v4, %v2037_v45 }
 0x12e   : > { %v2045_v63 = vpop.permute.xlu1 %2044  ;;  %v1136_v39 = vsel %vm1127_vm13, %v1117_v50, %v2031_v32  ;;  %v1137_v13 = vsel %vm1127_vm13, %v1118_v23, %v2032_v22 }
 0x12f   : > { %v2040_v55 = vpop.permute.xlu0 %2039  ;;  %v2047_v9 = vunpack.i.h.bf16 %v2045_v63  ;;  %v2046_v43 = vunpack.i.l.bf16 %v2045_v63 }
 0x130   : > { %v2042_v41 = vunpack.i.h.bf16 %v2040_v55  ;;  %v2041_v6 = vunpack.i.l.bf16 %v2040_v55 }
 0x131   : > { %v1163_v62 = vsel %vm1146_vm14, %v1144_v20, %v2046_v43  ;;  %v1164_v25 = vsel %vm1146_vm14, %v1145_v47, %v2047_v9 }
 0x132   : > { %v1155_v60 = vsel %vm1146_vm14, %v1136_v39, %v2041_v6  ;;  %v1156_v56 = vsel %vm1146_vm14, %v1137_v13, %v2042_v41  ;;  %v1173_v24 = vpack.c.bf16 %v1164_v25, %v1163_v62 }
 0x133   : > { %v1169_v30 = vpack.c.bf16 %v1156_v56, %v1155_v60 }
 0x134   : > { %1599 = vmatmul.mubr.msk.bf16.gmra.mrb[12].mxu1 %vm1210_vm15, %v1173_v24 }
 0x135   : > { %1583 = vmatmul.mubr.msk.bf16.gmra.mrb[16].mxu0 %vm1210_vm15, %v1169_v30 }
 0x189   : > { %v1275_v19 = vpop.f32.mrb[0].mxu0 }
 0x18a   : > { %v1347_v0 = vmul.f32 %v3054_v44, %v1275_v19  ;;  %v1568_v2 = vpop.f32.mrb[1].mxu0 }
 0x18b   : > { %v1278_v34 = vpop.f32.mrb[2].mxu0 }
 0x18c   : > { %v1372_v14 = vadd.f32 %v3059_v54, %v1347_v0  ;;  %v1348_v3 = vmul.f32 %v3054_v44, %v1278_v34  ;;  %v1569_v57 = vpop.f32.mrb[3].mxu0 }
 0x18e   : > { %1390 = vst.msk [vmem:[%s3065_s20] sm:$0xff] %vm1013_vm7, %v1372_v14  ;;  %v1373_v48 = vadd.f32 %v3059_v54, %v1348_v3 }
 0x190   : > { %1391 = vst.msk [vmem:[%s3065_s20 + $0x8] sm:$0xff] %vm1013_vm7, %v1373_v48 }
 0x1a7   : > { %v1315_v29 = vpop.f32.mrb[0].mxu1 }
 0x1a8   : > { %v1283_v8 = vpop.f32.mrb[4].mxu0  ;;  %v1357_v28 = vmul.f32 %v3054_v44, %v1315_v29  ;;  %v1588_v17 = vpop.f32.mrb[1].mxu1 }
 0x1a9   : > { %v1349_v16 = vmul.f32 %v3054_v44, %v1283_v8  ;;  %v1572_v35 = vpop.f32.mrb[5].mxu0  ;;  %v1318_v59 = vpop.f32.mrb[2].mxu1 }
 0x1aa   : > { %v1286_v37 = vpop.f32.mrb[6].mxu0  ;;  %v1382_v51 = vadd.f32 %v3059_v54, %v1357_v28  ;;  %v1358_v1 = vmul.f32 %v3054_v44, %v1318_v59  ;;  %v1589_v15 = vpop.f32.mrb[3].mxu1 }
 0x1ab   : > { %v1374_v58 = vadd.f32 %v3059_v54, %v1349_v16  ;;  %v1350_v5 = vmul.f32 %v3054_v44, %v1286_v37  ;;  %v1573_v38 = vpop.f32.mrb[7].mxu0 }
 0x1ac   : > { %1400 = vst.msk [vmem:[%s3065_s20 + $0x50] sm:$0xff] %vm1013_vm7, %v1382_v51  ;;  %v1383_v10 = vadd.f32 %v3059_v54, %v1358_v1 }
 0x1ad   : > { %1392 = vst.msk [vmem:[%s3065_s20 + $0x10] sm:$0xff] %vm1013_vm7, %v1374_v58  ;;  %v1375_v18 = vadd.f32 %v3059_v54, %v1350_v5 }
 0x1ae   : > { %1401 = vst.msk [vmem:[%s3065_s20 + $0x58] sm:$0xff] %vm1013_vm7, %v1383_v10 }
 0x1af   : > { %1393 = vst.msk [vmem:[%s3065_s20 + $0x18] sm:$0xff] %vm1013_vm7, %v1375_v18 }
 0x1c7   : > { %v1323_v42 = vpop.f32.mrb[4].mxu1 }
 0x1c8   : > { %v1291_v53 = vpop.f32.mrb[8].mxu0  ;;  %v1359_v27 = vmul.f32 %v3054_v44, %v1323_v42  ;;  %v1592_v46 = vpop.f32.mrb[5].mxu1 }
 0x1c9   : > { %v1351_v61 = vmul.f32 %v3054_v44, %v1291_v53  ;;  %v1576_v7 = vpop.f32.mrb[9].mxu0  ;;  %v1326_v31 = vpop.f32.mrb[6].mxu1 }
 0x1ca   : > { %v1294_v21 = vpop.f32.mrb[10].mxu0  ;;  %v1384_v36 = vadd.f32 %v3059_v54, %v1359_v27  ;;  %v1360_v33 = vmul.f32 %v3054_v44, %v1326_v31  ;;  %v1593_v32 = vpop.f32.mrb[7].mxu1 }
 0x1cb   : > { %v1376_v26 = vadd.f32 %v3059_v54, %v1351_v61  ;;  %v1352_v45 = vmul.f32 %v3054_v44, %v1294_v21  ;;  %v1577_v22 = vpop.f32.mrb[11].mxu0 }
 0x1cc   : > { %1402 = vst.msk [vmem:[%s3065_s20 + $0x60] sm:$0xff] %vm1013_vm7, %v1384_v36  ;;  %v1385_v12 = vadd.f32 %v3059_v54, %v1360_v33 }
 0x1cd   : > { %1394 = vst.msk [vmem:[%s3065_s20 + $0x20] sm:$0xff] %vm1013_vm7, %v1376_v26  ;;  %v1377_v11 = vadd.f32 %v3059_v54, %v1352_v45 }
 0x1ce   : > { %1403 = vst.msk [vmem:[%s3065_s20 + $0x68] sm:$0xff] %vm1013_vm7, %v1385_v12 }
 0x1cf   : > { %1395 = vst.msk [vmem:[%s3065_s20 + $0x28] sm:$0xff] %vm1013_vm7, %v1377_v11 }
 0x1e7   : > { %v1331_v52 = vpop.f32.mrb[8].mxu1 }
 0x1e8   : > { %v1299_v49 = vpop.f32.mrb[12].mxu0  ;;  %v1361_v4 = vmul.f32 %v3054_v44, %v1331_v52  ;;  %v1596_v23 = vpop.f32.mrb[9].mxu1 }
 0x1e9   : > { %v1353_v40 = vmul.f32 %v3054_v44, %v1299_v49  ;;  %v1580_v50 = vpop.f32.mrb[13].mxu0  ;;  %v1334_v55 = vpop.f32.mrb[10].mxu1 }
 0x1ea   : > { %v1302_v63 = vpop.f32.mrb[14].mxu0  ;;  %v1386_v43 = vadd.f32 %v3059_v54, %v1361_v4  ;;  %v1362_v6 = vmul.f32 %v3054_v44, %v1334_v55  ;;  %v1597_v47 = vpop.f32.mrb[11].mxu1 }
 0x1eb   : > { %v1378_v9 = vadd.f32 %v3059_v54, %v1353_v40  ;;  %v1354_v41 = vmul.f32 %v3054_v44, %v1302_v63  ;;  %v1581_v20 = vpop.f32.mrb[15].mxu0 }
 0x1ec   : > { %1404 = vst.msk [vmem:[%s3065_s20 + $0x70] sm:$0xff] %vm1013_vm7, %v1386_v43  ;;  %v1387_v13 = vadd.f32 %v3059_v54, %v1362_v6 }
 0x1ed   : > { %1396 = vst.msk [vmem:[%s3065_s20 + $0x30] sm:$0xff] %vm1013_vm7, %v1378_v9  ;;  %v1379_v39 = vadd.f32 %v3059_v54, %v1354_v41 }
 0x1ee   : > { %1405 = vst.msk [vmem:[%s3065_s20 + $0x78] sm:$0xff] %vm1013_vm7, %v1387_v13 }
 0x1ef   : > { %1397 = vst.msk [vmem:[%s3065_s20 + $0x38] sm:$0xff] %vm1013_vm7, %v1379_v39 }
 0x207   : > { %v1339_v25 = vpop.f32.mrb[12].mxu1 }
 0x208   : > { %v1307_v62 = vpop.f32.mrb[16].mxu0  ;;  %v1363_v56 = vmul.f32 %v3054_v44, %v1339_v25  ;;  %v1600_v30 = vpop.f32.mrb[13].mxu1 }
 0x209   : > { %v1355_v60 = vmul.f32 %v3054_v44, %v1307_v62  ;;  %v1584_v24 = vpop.f32.mrb[17].mxu0  ;;  %v1342_v0 = vpop.f32.mrb[14].mxu1 }
 0x20a   : > { %v1310_v19 = vpop.f32.mrb[18].mxu0  ;;  %v1388_v34 = vadd.f32 %v3059_v54, %v1363_v56  ;;  %v1364_v3 = vmul.f32 %v3054_v44, %v1342_v0  ;;  %v1601_v48 = vpop.f32.mrb[15].mxu1 }
 0x20b   : > { %v1380_v2 = vadd.f32 %v3059_v54, %v1355_v60  ;;  %v1356_v14 = vmul.f32 %v3054_v44, %v1310_v19  ;;  %v1585_v57 = vpop.f32.mrb[19].mxu0 }
 0x20c   : > { %1406 = vst.msk [vmem:[%s3065_s20 + $0x80] sm:$0xff] %vm1013_vm7, %v1388_v34  ;;  %v1389_v29 = vadd.f32 %v3059_v54, %v1364_v3 }
 0x20d   : > { %1398 = vst.msk [vmem:[%s3065_s20 + $0x40] sm:$0xff] %vm1013_vm7, %v1380_v2  ;;  %v1381_v8 = vadd.f32 %v3059_v54, %v1356_v14 }
 0x20e   : > { %1407 = vst.msk [vmem:[%s3065_s20 + $0x88] sm:$0xff] %vm1013_vm7, %v1389_v29 }
 0x20f   : > { %1399 = vst.msk [vmem:[%s3065_s20 + $0x48] sm:$0xff] %vm1013_vm7, %v1381_v8 }
 0x210 PF: > { %s20_s23 = sadd.s32 1, %s2105_s23   ;;  %s3158_s20 = smov %s2097_s22 }
 0x211   : > { %p17_p12 = scmp.ge.s32.totalorder %s20_s23, 6   ;;  %s3159_s21 = smov %s2101_s0 }
 0x212   : > { %s3160_s22 = smov %s3163_s24  ;;  %s3161_s0 = smov %s3167_s25 }
 0x213   :  { %19 = sbr.rel (!%p17_p12) target bundleno = 18 (0x12), region = 63 }

</bundles_post_ra>
